<compile_context>
chip_gen: v6e
topology: v6e:2x2x1
jax: 0.10.0
libtpu: 0.0.40
codegen_flags: <defaults>
</compile_context>

<pallas_src>
import numpy as np
import jax
import jax.numpy as jnp
from jax import lax
from jax.experimental import pallas as pl
from jax.experimental.pallas import tpu as pltpu

IN_DIM = 16
MEM_DIM = 32
MAX_CHILDREN = 8
SEQ_LEN = 5
BATCH = 2


# ----------------------------------------------------------------------------- #
# Tree container
# ----------------------------------------------------------------------------- #
class Tree:
    def __init__(self, idx, children=()):
        self.idx = idx
        self.children = list(children)
        self.state = None
        self.level = None
        self.slot = None


# ----------------------------------------------------------------------------- #
# Parameters (PyTorch-Linear-style uniform init); fused weights for the kernel,
# raw weights for the pure-JAX reference.
# ----------------------------------------------------------------------------- #
def init_params(key, in_dim, mem_dim):
    ks = jax.random.split(key, 4)

    def lin(k, fan_in, fan_out):
        kw, kb = jax.random.split(k)
        bound = 1.0 / (fan_in ** 0.5)
        w = jax.random.uniform(kw, (fan_in, fan_out), jnp.float32, -bound, bound)
        b = jax.random.uniform(kb, (1, fan_out), jnp.float32, -bound, bound)
        return w, b

    w_ioux, b_ioux = lin(ks[0], in_dim, 3 * mem_dim)
    w_iouh, b_iouh = lin(ks[1], mem_dim, 3 * mem_dim)
    w_fx, b_fx = lin(ks[2], in_dim, mem_dim)
    w_fh, b_fh = lin(ks[3], mem_dim, mem_dim)

    fused = dict(
        wx_big=jnp.concatenate([w_ioux, w_fx], axis=1),                       # (in, 4m)
        wh_big=jnp.concatenate([w_iouh, jnp.zeros((mem_dim, mem_dim),
                                                  jnp.float32)], axis=1),     # (m, 4m)
        b_big=jnp.concatenate([b_ioux + b_iouh, b_fx], axis=1),               # (1, 4m)
        wfh=w_fh, bfh=b_fh,
    )
    raw = dict(w_ioux=w_ioux, b_ioux=b_ioux, w_iouh=w_iouh, b_iouh=b_iouh,
               w_fx=w_fx, b_fx=b_fx, w_fh=w_fh, b_fh=b_fh)
    return fused, raw


# ----------------------------------------------------------------------------- #
# Host-side level scheduling: slot assignment, child-slot table (child-major),
# slot-ordered embeddings, and the constant reduce/expand 0-1 matrices.
# ----------------------------------------------------------------------------- #
def build_schedule(trees, inputs_np, max_children):
    batch, seq_len, in_dim = inputs_np.shape

    def compute_level(node):
        lv = 0
        for ch in node.children:
            lv = max(lv, compute_level(ch) + 1)
        node.level = lv
        return lv

    num_levels = 0
    for t in trees:
        num_levels = max(num_levels, compute_level(t) + 1)

    level_nodes = [[] for _ in range(num_levels)]

    def collect(node, b):
        for ch in node.children:
            collect(ch, b)
        level_nodes[node.level].append((b, node))

    for b, t in enumerate(trees):
        collect(t, b)

    m_max = max(len(lst) for lst in level_nodes)
    m_pad = max(8, -(-m_max // 8) * 8)                    # multiple of 8 sublanes
    n_child = max_children * m_pad

    zero_slot = num_levels * m_pad                        # always-zero child slot
    nslots = zero_slot + 8                                # pad state rows to x8

    # assign slots (level-major, position within level)
    for lv, lst in enumerate(level_nodes):
        for pos, (b, node) in enumerate(lst):
            node.slot = lv * m_pad + pos

    x_by_slot = np.zeros((num_levels * m_pad, in_dim), np.float32)
    # child-major layout: row [lvl*n_child + j*m_pad + pos] = slot of j-th child
    child_slot = np.full((num_levels * n_child, 1), zero_slot, np.int32)
    slot_map = np.full((batch, seq_len), zero_slot, np.int32)
    root_slots = np.zeros((batch,), np.int32)

    for lv, lst in enumerate(level_nodes):
        for pos, (b, node) in enumerate(lst):
            x_by_slot[node.slot] = inputs_np[b, node.idx]
            slot_map[b, node.idx] = node.slot
            assert len(node.children) <= max_children
            for j, ch in enumerate(node.children):
                assert 0 <= ch.slot < nslots               # host-side bounds check
                child_slot[lv * n_child + j * m_pad + pos, 0] = ch.slot

    for b, t in enumerate(trees):
        root_slots[b] = t.slot

    # constant reduce (child rows -> node rows) and expand (node -> child rows)
    r_mat = np.zeros((m_pad, n_child), np.float32)
    for j in range(max_children):
        for m in range(m_pad):
            r_mat[m, j * m_pad + m] = 1.0
    e_mat = np.ascontiguousarray(r_mat.T)

    return (num_levels, m_pad, child_slot, x_by_slot, slot_map, root_slots,
            zero_slot, nslots, r_mat, e_mat)


# ----------------------------------------------------------------------------- #
# Pallas kernel: a single grid step; levels iterated with an in-kernel loop.
# ----------------------------------------------------------------------------- #
def make_tree_lstm_call(mem_dim, max_children, num_levels, m_pad, nslots):
    n_child = max_children * m_pad
    slab = 4 * mem_dim                      # [c | h | h@Wfh+bfh | pad] = 128 lanes

    def kernel(child_slot_ref,              # VMEM (num_levels*n_child, 1) int32
               xw_ref,                      # VMEM (num_levels*m_pad, 4D) = x@Wx_big + b_big
               wh_ref,                      # VMEM (D, 4D)  (iouh weights, fx cols zero)
               wfh_ref, bfh_ref,            # VMEM (D, D), (1, D)
               r_ref, e_ref,                # VMEM (m_pad, n_child), (n_child, m_pad)
               state_ref):                  # out  (nslots, 4D) resident state slab
        # zero everything (also the always-zero padding slot) once, up front
        state_ref[...] = jnp.zeros_like(state_ref)

        wh = wh_ref[...]
        wfh = wfh_ref[...]
        bfh = bfh_ref[...]
        r_mat = r_ref[...]
        e_mat = e_ref[...]
        lane_iota = jax.lax.broadcasted_iota(jnp.int32, (n_child, nslots), 1)
        pad_zeros = jnp.zeros((m_pad, mem_dim), jnp.float32)   # hoisted (no CSE in loops)

        def level_body(lvl, carry):
            row0 = pl.multiple_of(lvl * m_pad, m_pad)
            crow0 = pl.multiple_of(lvl * n_child, n_child)

            xw = xw_ref[pl.ds(row0, m_pad), :]                        # (M, 4D) lane-dense
            fx = xw[:, 3 * mem_dim:4 * mem_dim]                       # (M, D)

            # ---- one-hot MXU gather of child [c | h | fh_pre] rows ---------- #
            cs = child_slot_ref[pl.ds(crow0, n_child), :]             # (C*M, 1) int32
            onehot = (lane_iota == cs).astype(jnp.float32)            # (C*M, S)
            child = jnp.dot(onehot, state_ref[...],
                            preferred_element_type=jnp.float32)       # (C*M, 4D)
            child_c = child[:, 0:mem_dim]
            child_h = child[:, mem_dim:2 * mem_dim]
            child_fp = child[:, 2 * mem_dim:3 * mem_dim]              # h@Wfh + bfh (0 for pad)

            # ---- child-axis reductions / fx expansion on the MXU ------------ #
            h_sum = jnp.dot(r_mat, child_h,
                            preferred_element_type=jnp.float32)       # (M, D)
            fx_c = jnp.dot(e_mat, fx,
                           preferred_element_type=jnp.float32)        # (C*M, D)
            f = jax.nn.sigmoid(child_fp + fx_c)
            fc_sum = jnp.dot(r_mat, f * child_c,
                             preferred_element_type=jnp.float32)      # (M, D)

            # ---- fused iou pre-activation: one MXU matmul + lane-dense add -- #
            pre = xw + jnp.dot(h_sum, wh,
                               preferred_element_type=jnp.float32)    # (M, 4D)
            i_g = jax.nn.sigmoid(pre[:, 0:mem_dim])
            o_g = jax.nn.sigmoid(pre[:, mem_dim:2 * mem_dim])
            u_g = jax.nn.sigmoid(pre[:, 2 * mem_dim:3 * mem_dim])     # sigmoid: matches torch

            c = i_g * u_g + fc_sum
            h = o_g * jnp.tanh(c)
            fh_pre = jnp.dot(h, wfh,
                             preferred_element_type=jnp.float32) + bfh  # 8-row node path

            # ---- lane-dense (128) 8-row-aligned writeback of this level ----- #
            state_ref[pl.ds(row0, m_pad), :] = jnp.concatenate(
                [c, h, fh_pre, pad_zeros], axis=-1)
            return carry

        lax.fori_loop(0, num_levels, level_body, 0, unroll=True)

    const2 = lambda i: (0, 0)
    fn = pl.pallas_call(
        kernel,
        grid=(1,),
        in_specs=[
            pl.BlockSpec((num_levels * n_child, 1), const2),          # child_slot
            pl.BlockSpec((num_levels * m_pad, slab), const2),         # xw (precomputed)
            pl.BlockSpec((mem_dim, slab), const2),                    # wh_big
            pl.BlockSpec((mem_dim, mem_dim), const2),                 # wfh
            pl.BlockSpec((1, mem_dim), const2),                       # bfh
            pl.BlockSpec((m_pad, n_child), const2),                   # reduce matrix
            pl.BlockSpec((n_child, m_pad), const2),                   # expand matrix
        ],
        out_specs=pl.BlockSpec((nslots, slab), const2),
        out_shape=jax.ShapeDtypeStruct((nslots, slab), jnp.float32),
        compiler_params=pltpu.CompilerParams(dimension_semantics=("arbitrary",)),
    )
    return jax.jit(fn)


def tree_lstm_forward(fused, trees, inputs, in_dim, mem_dim, max_children):
    batch, seq_len, _ = inputs.shape
    (num_levels, m_pad, child_slot, x_by_slot, slot_map, root_slots,
     zero_slot, nslots, r_mat, e_mat) = build_schedule(
         trees, np.asarray(inputs), max_children)

    # precompute x @ Wx_big + b_big once (lane-dense, removes Wx/b from VMEM)
    xw = jnp.asarray(x_by_slot) @ fused['wx_big'] + fused['b_big']     # (L*M, 4D)

    call = make_tree_lstm_call(mem_dim, max_children, num_levels, m_pad, nslots)
    state = call(jnp.asarray(child_slot), xw, fused['wh_big'],
                 fused['wfh'], fused['bfh'],
                 jnp.asarray(r_mat), jnp.asarray(e_mat))

    c_state = state[:, :mem_dim]
    h_state = state[:, mem_dim:2 * mem_dim]
    o_states = h_state[jnp.asarray(slot_map)]            # (batch, seq, mem_dim)
    c_root = c_state[jnp.asarray(root_slots)]            # (batch, mem_dim)
    h_root = h_state[jnp.asarray(root_slots)]
    return o_states, (c_root, h_root)


# ----------------------------------------------------------------------------- #
# Pure-JAX reference mirroring the torch module exactly (unfused weights)
# ----------------------------------------------------------------------------- #
def ref_node_forward(p, x, child_c, child_h):
    m = p['w_fh'].shape[0]
    h_sum = jnp.sum(child_h, axis=0, keepdims=True)
    iou = (x @ p['w_ioux'] + p['b_ioux']) + (h_sum @ p['w_iouh'] + p['b_iouh'])
    i = jax.nn.sigmoid(iou[:, :m])
    o = jax.nn.sigmoid(iou[:, m:2 * m])
    u = jax.nn.sigmoid(iou[:, 2 * m:])
    f = jax.nn.sigmoid(child_h @ p['w_fh'] + p['b_fh']
                       + (x @ p['w_fx'] + p['b_fx']))
    c = i * u + jnp.sum(f * child_c, axis=0, keepdims=True)
    h = o * jnp.tanh(c)
    return c, h


def ref_batch_forward(p, tree, inputs_k, mem_dim):
    for ch in tree.children:
        ref_batch_forward(p, ch, inputs_k, mem_dim)
    if len(tree.children) == 0:
        child_c = jnp.zeros((1, mem_dim), jnp.float32)
        child_h = jnp.zeros((1, mem_dim), jnp.float32)
    else:
        child_c = jnp.concatenate([ch.state[0] for ch in tree.children], axis=0)
        child_h = jnp.concatenate([ch.state[1] for ch in tree.children], axis=0)
    tree.state = ref_node_forward(p, inputs_k[tree.idx][None, :], child_c, child_h)


def ref_set_output(tree, outputs):
    for ch in tree.children:
        outputs = ref_set_output(ch, outputs)
    return outputs.at[tree.idx].set(tree.state[1][0])


def ref_forward(p, trees, inputs, mem_dim):
    o_states, c_states, h_states = [], [], []
    for k in range(inputs.shape[0]):
        ref_batch_forward(p, trees[k], inputs[k], mem_dim)
        outputs = jnp.zeros((inputs.shape[1], mem_dim), jnp.float32)
        outputs = ref_set_output(trees[k], outputs)
        o_states.append(outputs[None])
        c_states.append(trees[k].state[0])
        h_states.append(trees[k].state[1])
    return (jnp.concatenate(o_states, 0),
            (jnp.concatenate(c_states, 0), jnp.concatenate(h_states, 0)))


# ----------------------------------------------------------------------------- #
def build_trees():
    # tree 0: root(0) -> [leaf(1), node(2) -> [leaf(3), leaf(4)]]
    t0 = Tree(0, [Tree(1), Tree(2, [Tree(3), Tree(4)])])
    # tree 1: root(4) -> [leaf(0), leaf(1), leaf(2), leaf(3)]
    t1 = Tree(4, [Tree(0), Tree(1), Tree(2), Tree(3)])
    return [t0, t1]


if __name__ == "__main__":
    key = jax.random.PRNGKey(0)
    kp, kx = jax.random.split(key)

    fused, raw = init_params(kp, IN_DIM, MEM_DIM)
    inputs = jax.random.normal(kx, (BATCH, SEQ_LEN, IN_DIM), jnp.float32)

    trees = build_trees()
    o_states, (c_states, h_states) = tree_lstm_forward(
        fused, trees, inputs, IN_DIM, MEM_DIM, MAX_CHILDREN)
    jax.block_until_ready((o_states, c_states, h_states))

    # correctness check against a pure-JAX reference of the torch semantics
    ref_trees = build_trees()
    o_ref, (c_ref, h_ref) = ref_forward(raw, ref_trees, inputs, MEM_DIM)

    assert o_states.shape == (BATCH, SEQ_LEN, MEM_DIM)
    assert c_states.shape == (BATCH, MEM_DIM) and h_states.shape == (BATCH, MEM_DIM)
    assert jnp.max(jnp.abs(o_states - o_ref)) < 1e-4
    assert jnp.max(jnp.abs(c_states - c_ref)) < 1e-4
    assert jnp.max(jnp.abs(h_states - h_ref)) < 1e-4

    print("KERNEL_OK")
</pallas_src>

<mosaic_0001>
module attributes {stable_mosaic.version = 11 : i64} {
  func.func @kernel(%arg0: i32, %arg1: memref<192x1xi32, #tpu.memory_space<vmem>>, %arg2: memref<24x128xf32, #tpu.memory_space<vmem>>, %arg3: memref<32x128xf32, #tpu.memory_space<vmem>>, %arg4: memref<32x32xf32, #tpu.memory_space<vmem>>, %arg5: memref<1x32xf32, #tpu.memory_space<vmem>>, %arg6: memref<8x64xf32, #tpu.memory_space<vmem>>, %arg7: memref<64x8xf32, #tpu.memory_space<vmem>>, %arg8: memref<32x128xf32, #tpu.memory_space<vmem>>) attributes {dimension_semantics = [#tpu.dimension_semantics<arbitrary>], iteration_bounds = array<i64: 1>, scalar_prefetch = 0 : i64, scratch_operands = 0 : i64, tpu.core_type = #tpu.core_type<tc>, window_params = [{pipeline_mode = #tpu.pipeline_mode<synchronous>, transform_indices = @transform_0, window_bounds = array<i64: 192, 1>}, {pipeline_mode = #tpu.pipeline_mode<synchronous>, transform_indices = @transform_1, window_bounds = array<i64: 24, 128>}, {pipeline_mode = #tpu.pipeline_mode<synchronous>, transform_indices = @transform_2, window_bounds = array<i64: 32, 128>}, {pipeline_mode = #tpu.pipeline_mode<synchronous>, transform_indices = @transform_3, window_bounds = array<i64: 32, 32>}, {pipeline_mode = #tpu.pipeline_mode<synchronous>, transform_indices = @transform_4, window_bounds = array<i64: 1, 32>}, {pipeline_mode = #tpu.pipeline_mode<synchronous>, transform_indices = @transform_5, window_bounds = array<i64: 8, 64>}, {pipeline_mode = #tpu.pipeline_mode<synchronous>, transform_indices = @transform_6, window_bounds = array<i64: 64, 8>}, {pipeline_mode = #tpu.pipeline_mode<synchronous>, transform_indices = @transform_7, window_bounds = array<i64: 32, 128>}]} {
    %cst = arith.constant 0.000000e+00 : f32
    %0 = vector.broadcast %cst : f32 to vector<32x128xf32>
    %c0 = arith.constant 0 : index
    %c0_0 = arith.constant 0 : index
    %1 = vector.load %arg8[%c0, %c0_0] : memref<32x128xf32, #tpu.memory_space<vmem>>, vector<32x128xf32>
    tpu.vector_store %arg8[%c0, %c0_0], %0 {strides = array<i32>} : memref<32x128xf32, #tpu.memory_space<vmem>>, vector<32x128xf32>,
    %c0_1 = arith.constant 0 : index
    %c0_2 = arith.constant 0 : index
    %2 = vector.load %arg3[%c0_1, %c0_2] : memref<32x128xf32, #tpu.memory_space<vmem>>, vector<32x128xf32>
    %c0_3 = arith.constant 0 : index
    %c0_4 = arith.constant 0 : index
    %3 = vector.load %arg4[%c0_3, %c0_4] : memref<32x32xf32, #tpu.memory_space<vmem>>, vector<32x32xf32>
    %c0_5 = arith.constant 0 : index
    %c0_6 = arith.constant 0 : index
    %4 = vector.load %arg5[%c0_5, %c0_6] : memref<1x32xf32, #tpu.memory_space<vmem>>, vector<1x32xf32>
    %c0_7 = arith.constant 0 : index
    %c0_8 = arith.constant 0 : index
    %5 = vector.load %arg6[%c0_7, %c0_8] : memref<8x64xf32, #tpu.memory_space<vmem>>, vector<8x64xf32>
    %c0_9 = arith.constant 0 : index
    %c0_10 = arith.constant 0 : index
    %6 = vector.load %arg7[%c0_9, %c0_10] : memref<64x8xf32, #tpu.memory_space<vmem>>, vector<64x8xf32>
    %7 = tpu.iota {dimensions = array<i32: 1>} : vector<64x32xi32>
    %cst_11 = arith.constant 0.000000e+00 : f32
    %8 = vector.broadcast %cst_11 : f32 to vector<8x32xf32>
    %c0_i32 = arith.constant 0 : i32
    %c8_i32 = arith.constant 8 : i32
    %9 = arith.muli %c0_i32, %c8_i32 : i32
    %10 = tpu.assume_multiple %9, 8 : i32
    %c64_i32 = arith.constant 64 : i32
    %11 = arith.muli %c0_i32, %c64_i32 : i32
    %12 = tpu.assume_multiple %11, 64 : i32
    %13 = arith.index_cast %10 : i32 to index
    %c0_12 = arith.constant 0 : index
    %14 = vector.load %arg2[%13, %c0_12] : memref<24x128xf32, #tpu.memory_space<vmem>>, vector<8x128xf32>
    %15 = vector.extract_strided_slice %14 {offsets = [0, 96], sizes = [8, 32], strides = [1, 1]} : vector<8x128xf32> to vector<8x32xf32>
    %16 = arith.index_cast %12 : i32 to index
    %c0_13 = arith.constant 0 : index
    %17 = vector.load %arg1[%16, %c0_13] : memref<192x1xi32, #tpu.memory_space<vmem>>, vector<64x1xi32>
    %18 = vector.broadcast %17 : vector<64x1xi32> to vector<64x32xi32>
    %19 = arith.cmpi eq, %7, %18 : vector<64x32xi32>
    %20 = arith.extui %19 : vector<64x32xi1> to vector<64x32xi32>
    %21 = arith.sitofp %20 : vector<64x32xi32> to vector<64x32xf32>
    %c0_14 = arith.constant 0 : index
    %c0_15 = arith.constant 0 : index
    %22 = vector.load %arg8[%c0_14, %c0_15] : memref<32x128xf32, #tpu.memory_space<vmem>>, vector<32x128xf32>
    %cst_16 = arith.constant dense<0.000000e+00> : vector<64x128xf32>
    %23 = tpu.matmul %21, %22, %cst_16 {dimension_numbers = #tpu.dot_dimension_numbers<[1], [0], [0], [1], [0, 0, 1, 1], [], []>} : vector<64x32xf32>, vector<32x128xf32>, vector<64x128xf32> -> vector<64x128xf32>
    %24 = vector.extract_strided_slice %23 {offsets = [0, 0], sizes = [64, 32], strides = [1, 1]} : vector<64x128xf32> to vector<64x32xf32>
    %25 = vector.extract_strided_slice %23 {offsets = [0, 32], sizes = [64, 32], strides = [1, 1]} : vector<64x128xf32> to vector<64x32xf32>
    %26 = vector.extract_strided_slice %23 {offsets = [0, 64], sizes = [64, 32], strides = [1, 1]} : vector<64x128xf32> to vector<64x32xf32>
    %cst_17 = arith.constant dense<0.000000e+00> : vector<8x32xf32>
    %27 = tpu.matmul %5, %25, %cst_17 {dimension_numbers = #tpu.dot_dimension_numbers<[1], [0], [0], [1], [0, 0, 1, 1], [], []>} : vector<8x64xf32>, vector<64x32xf32>, vector<8x32xf32> -> vector<8x32xf32>
    %cst_18 = arith.constant dense<0.000000e+00> : vector<64x32xf32>
    %28 = tpu.matmul %6, %15, %cst_18 {dimension_numbers = #tpu.dot_dimension_numbers<[1], [0], [0], [1], [0, 0, 1, 1], [], []>} : vector<64x8xf32>, vector<8x32xf32>, vector<64x32xf32> -> vector<64x32xf32>
    %29 = arith.addf %26, %28 : vector<64x32xf32>
    %30 = arith.negf %29 : vector<64x32xf32>
    %31 = math.exp %30 : vector<64x32xf32>
    %cst_19 = arith.constant 1.000000e+00 : f32
    %32 = vector.broadcast %cst_19 : f32 to vector<64x32xf32>
    %33 = arith.addf %32, %31 : vector<64x32xf32>
    %34 = arith.divf %32, %33 : vector<64x32xf32>
    %35 = arith.mulf %34, %24 : vector<64x32xf32>
    %cst_20 = arith.constant dense<0.000000e+00> : vector<8x32xf32>
    %36 = tpu.matmul %5, %35, %cst_20 {dimension_numbers = #tpu.dot_dimension_numbers<[1], [0], [0], [1], [0, 0, 1, 1], [], []>} : vector<8x64xf32>, vector<64x32xf32>, vector<8x32xf32> -> vector<8x32xf32>
    %cst_21 = arith.constant dense<0.000000e+00> : vector<8x128xf32>
    %37 = tpu.matmul %27, %2, %cst_21 {dimension_numbers = #tpu.dot_dimension_numbers<[1], [0], [0], [1], [0, 0, 1, 1], [], []>} : vector<8x32xf32>, vector<32x128xf32>, vector<8x128xf32> -> vector<8x128xf32>
    %38 = arith.addf %14, %37 : vector<8x128xf32>
    %39 = vector.extract_strided_slice %38 {offsets = [0, 0], sizes = [8, 32], strides = [1, 1]} : vector<8x128xf32> to vector<8x32xf32>
    %40 = arith.negf %39 : vector<8x32xf32>
    %41 = math.exp %40 : vector<8x32xf32>
    %cst_22 = arith.constant 1.000000e+00 : f32
    %42 = vector.broadcast %cst_22 : f32 to vector<8x32xf32>
    %43 = arith.addf %42, %41 : vector<8x32xf32>
    %44 = arith.divf %42, %43 : vector<8x32xf32>
    %45 = vector.extract_strided_slice %38 {offsets = [0, 32], sizes = [8, 32], strides = [1, 1]} : vector<8x128xf32> to vector<8x32xf32>
    %46 = arith.negf %45 : vector<8x32xf32>
    %47 = math.exp %46 : vector<8x32xf32>
    %cst_23 = arith.constant 1.000000e+00 : f32
    %48 = vector.broadcast %cst_23 : f32 to vector<8x32xf32>
    %49 = arith.addf %48, %47 : vector<8x32xf32>
    %50 = arith.divf %48, %49 : vector<8x32xf32>
    %51 = vector.extract_strided_slice %38 {offsets = [0, 64], sizes = [8, 32], strides = [1, 1]} : vector<8x128xf32> to vector<8x32xf32>
    %52 = arith.negf %51 : vector<8x32xf32>
    %53 = math.exp %52 : vector<8x32xf32>
    %cst_24 = arith.constant 1.000000e+00 : f32
    %54 = vector.broadcast %cst_24 : f32 to vector<8x32xf32>
    %55 = arith.addf %54, %53 : vector<8x32xf32>
    %56 = arith.divf %54, %55 : vector<8x32xf32>
    %57 = arith.mulf %44, %56 : vector<8x32xf32>
    %58 = arith.addf %57, %36 : vector<8x32xf32>
    %59 = math.tanh %58 : vector<8x32xf32>
    %60 = arith.mulf %50, %59 : vector<8x32xf32>
    %cst_25 = arith.constant dense<0.000000e+00> : vector<8x32xf32>
    %61 = tpu.matmul %60, %3, %cst_25 {dimension_numbers = #tpu.dot_dimension_numbers<[1], [0], [0], [1], [0, 0, 1, 1], [], []>} : vector<8x32xf32>, vector<32x32xf32>, vector<8x32xf32> -> vector<8x32xf32>
    %62 = vector.broadcast %4 : vector<1x32xf32> to vector<8x32xf32>
    %63 = arith.addf %61, %62 : vector<8x32xf32>
    %64 = tpu.concatenate %58, %60, %63, %8 in 1 : vector<8x32xf32>, vector<8x32xf32>, vector<8x32xf32>, vector<8x32xf32> -> vector<8x128xf32>
    %65 = arith.index_cast %10 : i32 to index
    %c0_26 = arith.constant 0 : index
    %66 = vector.load %arg8[%65, %c0_26] : memref<32x128xf32, #tpu.memory_space<vmem>>, vector<8x128xf32>
    tpu.vector_store %arg8[%65, %c0_26], %64 {strides = array<i32>} : memref<32x128xf32, #tpu.memory_space<vmem>>, vector<8x128xf32>,
    %c1_i32 = arith.constant 1 : i32
    %c8_i32_27 = arith.constant 8 : i32
    %67 = arith.muli %c1_i32, %c8_i32_27 : i32
    %68 = tpu.assume_multiple %67, 8 : i32
    %c64_i32_28 = arith.constant 64 : i32
    %69 = arith.muli %c1_i32, %c64_i32_28 : i32
    %70 = tpu.assume_multiple %69, 64 : i32
    %71 = arith.index_cast %68 : i32 to index
    %c0_29 = arith.constant 0 : index
    %72 = vector.load %arg2[%71, %c0_29] : memref<24x128xf32, #tpu.memory_space<vmem>>, vector<8x128xf32>
    %73 = vector.extract_strided_slice %72 {offsets = [0, 96], sizes = [8, 32], strides = [1, 1]} : vector<8x128xf32> to vector<8x32xf32>
    %74 = arith.index_cast %70 : i32 to index
    %c0_30 = arith.constant 0 : index
    %75 = vector.load %arg1[%74, %c0_30] : memref<192x1xi32, #tpu.memory_space<vmem>>, vector<64x1xi32>
    %76 = vector.broadcast %75 : vector<64x1xi32> to vector<64x32xi32>
    %77 = arith.cmpi eq, %7, %76 : vector<64x32xi32>
    %78 = arith.extui %77 : vector<64x32xi1> to vector<64x32xi32>
    %79 = arith.sitofp %78 : vector<64x32xi32> to vector<64x32xf32>
    %c0_31 = arith.constant 0 : index
    %c0_32 = arith.constant 0 : index
    %80 = vector.load %arg8[%c0_31, %c0_32] : memref<32x128xf32, #tpu.memory_space<vmem>>, vector<32x128xf32>
    %cst_33 = arith.constant dense<0.000000e+00> : vector<64x128xf32>
    %81 = tpu.matmul %79, %80, %cst_33 {dimension_numbers = #tpu.dot_dimension_numbers<[1], [0], [0], [1], [0, 0, 1, 1], [], []>} : vector<64x32xf32>, vector<32x128xf32>, vector<64x128xf32> -> vector<64x128xf32>
    %82 = vector.extract_strided_slice %81 {offsets = [0, 0], sizes = [64, 32], strides = [1, 1]} : vector<64x128xf32> to vector<64x32xf32>
    %83 = vector.extract_strided_slice %81 {offsets = [0, 32], sizes = [64, 32], strides = [1, 1]} : vector<64x128xf32> to vector<64x32xf32>
    %84 = vector.extract_strided_slice %81 {offsets = [0, 64], sizes = [64, 32], strides = [1, 1]} : vector<64x128xf32> to vector<64x32xf32>
    %cst_34 = arith.constant dense<0.000000e+00> : vector<8x32xf32>
    %85 = tpu.matmul %5, %83, %cst_34 {dimension_numbers = #tpu.dot_dimension_numbers<[1], [0], [0], [1], [0, 0, 1, 1], [], []>} : vector<8x64xf32>, vector<64x32xf32>, vector<8x32xf32> -> vector<8x32xf32>
    %cst_35 = arith.constant dense<0.000000e+00> : vector<64x32xf32>
    %86 = tpu.matmul %6, %73, %cst_35 {dimension_numbers = #tpu.dot_dimension_numbers<[1], [0], [0], [1], [0, 0, 1, 1], [], []>} : vector<64x8xf32>, vector<8x32xf32>, vector<64x32xf32> -> vector<64x32xf32>
    %87 = arith.addf %84, %86 : vector<64x32xf32>
    %88 = arith.negf %87 : vector<64x32xf32>
    %89 = math.exp %88 : vector<64x32xf32>
    %cst_36 = arith.constant 1.000000e+00 : f32
    %90 = vector.broadcast %cst_36 : f32 to vector<64x32xf32>
    %91 = arith.addf %90, %89 : vector<64x32xf32>
    %92 = arith.divf %90, %91 : vector<64x32xf32>
    %93 = arith.mulf %92, %82 : vector<64x32xf32>
    %cst_37 = arith.constant dense<0.000000e+00> : vector<8x32xf32>
    %94 = tpu.matmul %5, %93, %cst_37 {dimension_numbers = #tpu.dot_dimension_numbers<[1], [0], [0], [1], [0, 0, 1, 1], [], []>} : vector<8x64xf32>, vector<64x32xf32>, vector<8x32xf32> -> vector<8x32xf32>
    %cst_38 = arith.constant dense<0.000000e+00> : vector<8x128xf32>
    %95 = tpu.matmul %85, %2, %cst_38 {dimension_numbers = #tpu.dot_dimension_numbers<[1], [0], [0], [1], [0, 0, 1, 1], [], []>} : vector<8x32xf32>, vector<32x128xf32>, vector<8x128xf32> -> vector<8x128xf32>
    %96 = arith.addf %72, %95 : vector<8x128xf32>
    %97 = vector.extract_strided_slice %96 {offsets = [0, 0], sizes = [8, 32], strides = [1, 1]} : vector<8x128xf32> to vector<8x32xf32>
    %98 = arith.negf %97 : vector<8x32xf32>
    %99 = math.exp %98 : vector<8x32xf32>
    %cst_39 = arith.constant 1.000000e+00 : f32
    %100 = vector.broadcast %cst_39 : f32 to vector<8x32xf32>
    %101 = arith.addf %100, %99 : vector<8x32xf32>
    %102 = arith.divf %100, %101 : vector<8x32xf32>
    %103 = vector.extract_strided_slice %96 {offsets = [0, 32], sizes = [8, 32], strides = [1, 1]} : vector<8x128xf32> to vector<8x32xf32>
    %104 = arith.negf %103 : vector<8x32xf32>
    %105 = math.exp %104 : vector<8x32xf32>
    %cst_40 = arith.constant 1.000000e+00 : f32
    %106 = vector.broadcast %cst_40 : f32 to vector<8x32xf32>
    %107 = arith.addf %106, %105 : vector<8x32xf32>
    %108 = arith.divf %106, %107 : vector<8x32xf32>
    %109 = vector.extract_strided_slice %96 {offsets = [0, 64], sizes = [8, 32], strides = [1, 1]} : vector<8x128xf32> to vector<8x32xf32>
    %110 = arith.negf %109 : vector<8x32xf32>
    %111 = math.exp %110 : vector<8x32xf32>
    %cst_41 = arith.constant 1.000000e+00 : f32
    %112 = vector.broadcast %cst_41 : f32 to vector<8x32xf32>
    %113 = arith.addf %112, %111 : vector<8x32xf32>
    %114 = arith.divf %112, %113 : vector<8x32xf32>
    %115 = arith.mulf %102, %114 : vector<8x32xf32>
    %116 = arith.addf %115, %94 : vector<8x32xf32>
    %117 = math.tanh %116 : vector<8x32xf32>
    %118 = arith.mulf %108, %117 : vector<8x32xf32>
    %cst_42 = arith.constant dense<0.000000e+00> : vector<8x32xf32>
    %119 = tpu.matmul %118, %3, %cst_42 {dimension_numbers = #tpu.dot_dimension_numbers<[1], [0], [0], [1], [0, 0, 1, 1], [], []>} : vector<8x32xf32>, vector<32x32xf32>, vector<8x32xf32> -> vector<8x32xf32>
    %120 = vector.broadcast %4 : vector<1x32xf32> to vector<8x32xf32>
    %121 = arith.addf %119, %120 : vector<8x32xf32>
    %122 = tpu.concatenate %116, %118, %121, %8 in 1 : vector<8x32xf32>, vector<8x32xf32>, vector<8x32xf32>, vector<8x32xf32> -> vector<8x128xf32>
    %123 = arith.index_cast %68 : i32 to index
    %c0_43 = arith.constant 0 : index
    %124 = vector.load %arg8[%123, %c0_43] : memref<32x128xf32, #tpu.memory_space<vmem>>, vector<8x128xf32>
    tpu.vector_store %arg8[%123, %c0_43], %122 {strides = array<i32>} : memref<32x128xf32, #tpu.memory_space<vmem>>, vector<8x128xf32>,
    %c2_i32 = arith.constant 2 : i32
    %c8_i32_44 = arith.constant 8 : i32
    %125 = arith.muli %c2_i32, %c8_i32_44 : i32
    %126 = tpu.assume_multiple %125, 8 : i32
    %c64_i32_45 = arith.constant 64 : i32
    %127 = arith.muli %c2_i32, %c64_i32_45 : i32
    %128 = tpu.assume_multiple %127, 64 : i32
    %129 = arith.index_cast %126 : i32 to index
    %c0_46 = arith.constant 0 : index
    %130 = vector.load %arg2[%129, %c0_46] : memref<24x128xf32, #tpu.memory_space<vmem>>, vector<8x128xf32>
    %131 = vector.extract_strided_slice %130 {offsets = [0, 96], sizes = [8, 32], strides = [1, 1]} : vector<8x128xf32> to vector<8x32xf32>
    %132 = arith.index_cast %128 : i32 to index
    %c0_47 = arith.constant 0 : index
    %133 = vector.load %arg1[%132, %c0_47] : memref<192x1xi32, #tpu.memory_space<vmem>>, vector<64x1xi32>
    %134 = vector.broadcast %133 : vector<64x1xi32> to vector<64x32xi32>
    %135 = arith.cmpi eq, %7, %134 : vector<64x32xi32>
    %136 = arith.extui %135 : vector<64x32xi1> to vector<64x32xi32>
    %137 = arith.sitofp %136 : vector<64x32xi32> to vector<64x32xf32>
    %c0_48 = arith.constant 0 : index
    %c0_49 = arith.constant 0 : index
    %138 = vector.load %arg8[%c0_48, %c0_49] : memref<32x128xf32, #tpu.memory_space<vmem>>, vector<32x128xf32>
    %cst_50 = arith.constant dense<0.000000e+00> : vector<64x128xf32>
    %139 = tpu.matmul %137, %138, %cst_50 {dimension_numbers = #tpu.dot_dimension_numbers<[1], [0], [0], [1], [0, 0, 1, 1], [], []>} : vector<64x32xf32>, vector<32x128xf32>, vector<64x128xf32> -> vector<64x128xf32>
    %140 = vector.extract_strided_slice %139 {offsets = [0, 0], sizes = [64, 32], strides = [1, 1]} : vector<64x128xf32> to vector<64x32xf32>
    %141 = vector.extract_strided_slice %139 {offsets = [0, 32], sizes = [64, 32], strides = [1, 1]} : vector<64x128xf32> to vector<64x32xf32>
    %142 = vector.extract_strided_slice %139 {offsets = [0, 64], sizes = [64, 32], strides = [1, 1]} : vector<64x128xf32> to vector<64x32xf32>
    %cst_51 = arith.constant dense<0.000000e+00> : vector<8x32xf32>
    %143 = tpu.matmul %5, %141, %cst_51 {dimension_numbers = #tpu.dot_dimension_numbers<[1], [0], [0], [1], [0, 0, 1, 1], [], []>} : vector<8x64xf32>, vector<64x32xf32>, vector<8x32xf32> -> vector<8x32xf32>
    %cst_52 = arith.constant dense<0.000000e+00> : vector<64x32xf32>
    %144 = tpu.matmul %6, %131, %cst_52 {dimension_numbers = #tpu.dot_dimension_numbers<[1], [0], [0], [1], [0, 0, 1, 1], [], []>} : vector<64x8xf32>, vector<8x32xf32>, vector<64x32xf32> -> vector<64x32xf32>
    %145 = arith.addf %142, %144 : vector<64x32xf32>
    %146 = arith.negf %145 : vector<64x32xf32>
    %147 = math.exp %146 : vector<64x32xf32>
    %cst_53 = arith.constant 1.000000e+00 : f32
    %148 = vector.broadcast %cst_53 : f32 to vector<64x32xf32>
    %149 = arith.addf %148, %147 : vector<64x32xf32>
    %150 = arith.divf %148, %149 : vector<64x32xf32>
    %151 = arith.mulf %150, %140 : vector<64x32xf32>
    %cst_54 = arith.constant dense<0.000000e+00> : vector<8x32xf32>
    %152 = tpu.matmul %5, %151, %cst_54 {dimension_numbers = #tpu.dot_dimension_numbers<[1], [0], [0], [1], [0, 0, 1, 1], [], []>} : vector<8x64xf32>, vector<64x32xf32>, vector<8x32xf32> -> vector<8x32xf32>
    %cst_55 = arith.constant dense<0.000000e+00> : vector<8x128xf32>
    %153 = tpu.matmul %143, %2, %cst_55 {dimension_numbers = #tpu.dot_dimension_numbers<[1], [0], [0], [1], [0, 0, 1, 1], [], []>} : vector<8x32xf32>, vector<32x128xf32>, vector<8x128xf32> -> vector<8x128xf32>
    %154 = arith.addf %130, %153 : vector<8x128xf32>
    %155 = vector.extract_strided_slice %154 {offsets = [0, 0], sizes = [8, 32], strides = [1, 1]} : vector<8x128xf32> to vector<8x32xf32>
    %156 = arith.negf %155 : vector<8x32xf32>
    %157 = math.exp %156 : vector<8x32xf32>
    %cst_56 = arith.constant 1.000000e+00 : f32
    %158 = vector.broadcast %cst_56 : f32 to vector<8x32xf32>
    %159 = arith.addf %158, %157 : vector<8x32xf32>
    %160 = arith.divf %158, %159 : vector<8x32xf32>
    %161 = vector.extract_strided_slice %154 {offsets = [0, 32], sizes = [8, 32], strides = [1, 1]} : vector<8x128xf32> to vector<8x32xf32>
    %162 = arith.negf %161 : vector<8x32xf32>
    %163 = math.exp %162 : vector<8x32xf32>
    %cst_57 = arith.constant 1.000000e+00 : f32
    %164 = vector.broadcast %cst_57 : f32 to vector<8x32xf32>
    %165 = arith.addf %164, %163 : vector<8x32xf32>
    %166 = arith.divf %164, %165 : vector<8x32xf32>
    %167 = vector.extract_strided_slice %154 {offsets = [0, 64], sizes = [8, 32], strides = [1, 1]} : vector<8x128xf32> to vector<8x32xf32>
    %168 = arith.negf %167 : vector<8x32xf32>
    %169 = math.exp %168 : vector<8x32xf32>
    %cst_58 = arith.constant 1.000000e+00 : f32
    %170 = vector.broadcast %cst_58 : f32 to vector<8x32xf32>
    %171 = arith.addf %170, %169 : vector<8x32xf32>
    %172 = arith.divf %170, %171 : vector<8x32xf32>
    %173 = arith.mulf %160, %172 : vector<8x32xf32>
    %174 = arith.addf %173, %152 : vector<8x32xf32>
    %175 = math.tanh %174 : vector<8x32xf32>
    %176 = arith.mulf %166, %175 : vector<8x32xf32>
    %cst_59 = arith.constant dense<0.000000e+00> : vector<8x32xf32>
    %177 = tpu.matmul %176, %3, %cst_59 {dimension_numbers = #tpu.dot_dimension_numbers<[1], [0], [0], [1], [0, 0, 1, 1], [], []>} : vector<8x32xf32>, vector<32x32xf32>, vector<8x32xf32> -> vector<8x32xf32>
    %178 = vector.broadcast %4 : vector<1x32xf32> to vector<8x32xf32>
    %179 = arith.addf %177, %178 : vector<8x32xf32>
    %180 = tpu.concatenate %174, %176, %179, %8 in 1 : vector<8x32xf32>, vector<8x32xf32>, vector<8x32xf32>, vector<8x32xf32> -> vector<8x128xf32>
    %181 = arith.index_cast %126 : i32 to index
    %c0_60 = arith.constant 0 : index
    %182 = vector.load %arg8[%181, %c0_60] : memref<32x128xf32, #tpu.memory_space<vmem>>, vector<8x128xf32>
    tpu.vector_store %arg8[%181, %c0_60], %180 {strides = array<i32>} : memref<32x128xf32, #tpu.memory_space<vmem>>, vector<8x128xf32>,
    %c3_i32 = arith.constant 3 : i32
    return
  }
  func.func @transform_0(%arg0: i32) -> (i32, i32) {
    %c0_i32 = arith.constant 0 : i32
    %c0_i32_0 = arith.constant 0 : i32
    %c0_i32_1 = arith.constant 0 : i32
    return %c0_i32, %c0_i32_0 : i32, i32
  }
  func.func @transform_1(%arg0: i32) -> (i32, i32) {
    %c0_i32 = arith.constant 0 : i32
    %c0_i32_0 = arith.constant 0 : i32
    %c0_i32_1 = arith.constant 0 : i32
    return %c0_i32, %c0_i32_0 : i32, i32
  }
  func.func @transform_2(%arg0: i32) -> (i32, i32) {
    %c0_i32 = arith.constant 0 : i32
    %c0_i32_0 = arith.constant 0 : i32
    %c0_i32_1 = arith.constant 0 : i32
    return %c0_i32, %c0_i32_0 : i32, i32
  }
  func.func @transform_3(%arg0: i32) -> (i32, i32) {
    %c0_i32 = arith.constant 0 : i32
    %c0_i32_0 = arith.constant 0 : i32
    %c0_i32_1 = arith.constant 0 : i32
    return %c0_i32, %c0_i32_0 : i32, i32
  }
  func.func @transform_4(%arg0: i32) -> (i32, i32) {
    %c0_i32 = arith.constant 0 : i32
    %c0_i32_0 = arith.constant 0 : i32
    %c0_i32_1 = arith.constant 0 : i32
    return %c0_i32, %c0_i32_0 : i32, i32
  }
  func.func @transform_5(%arg0: i32) -> (i32, i32) {
    %c0_i32 = arith.constant 0 : i32
    %c0_i32_0 = arith.constant 0 : i32
    %c0_i32_1 = arith.constant 0 : i32
    return %c0_i32, %c0_i32_0 : i32, i32
  }
  func.func @transform_6(%arg0: i32) -> (i32, i32) {
    %c0_i32 = arith.constant 0 : i32
    %c0_i32_0 = arith.constant 0 : i32
    %c0_i32_1 = arith.constant 0 : i32
    return %c0_i32, %c0_i32_0 : i32, i32
  }
  func.func @transform_7(%arg0: i32) -> (i32, i32) {
    %c0_i32 = arith.constant 0 : i32
    %c0_i32_0 = arith.constant 0 : i32
    %c0_i32_1 = arith.constant 0 : i32
    return %c0_i32, %c0_i32_0 : i32, i32
  }
}

</mosaic_0001>

<bundles_post_ra>
// kernel: tpu_custom_call.1
= control target key start
LH: loop header
LB: loop body
LE: loop exit
PB: predicated region body
PF: predicated region fallthrough
CT: control target
= control target key end

     0   :  { %v3231_v2 = vmov 0   ;;  %v3232_v3 = vmov 0.0   ;;  %s4022_s0 = inlined_call_operand.vmem [shape: s32[192,1], index: 0, kind: input, shape index: {}]   ;;  %s4023_s1 = inlined_call_operand.vmem [shape: f32[24,128], index: 1, kind: input, shape index: {}]   ;;  %s4024_s2 = inlined_call_operand.vmem [shape: f32[32,128], index: 2, kind: input, shape index: {}]   ;;  %s4025_s3 = inlined_call_operand.vmem [shape: f32[32,32], index: 3, kind: input, shape index: {}]   ;;  %s4026_s4 = inlined_call_operand.vmem [shape: f32[1,32], index: 4, kind: input, shape index: {}]   ;;  %s4027_s5 = inlined_call_operand.vmem [shape: f32[8,64], index: 5, kind: input, shape index: {}]   ;;  %s4028_s6 = inlined_call_operand.vmem [shape: f32[64,8], index: 6, kind: input, shape index: {}]   ;;  %s4029_s7 = inlined_call_operand.hbm [shape: f32[32,128], index: 7, kind: output, shape index: {}]  }
   0x1   :  { %v54_v0 = vld [vmem:[%s4022_s0 + $0x10] sm:$0xff]  ;;  %v52_v1 = vld [vmem:[%s4022_s0] sm:$0xff]  ;;  %3073 = vset.pattern.permute.xlu1 %v3231_v2  ;;  %3072 = vset.pattern.permute.xlu0 %v3231_v2  ;;  %30 = vst [vmem:[#allocation2 + $0x18] sm:$0xff] %v3232_v3 }
   0x2   :  { %67 = vperm.xlu1 %3073, %v54_v0   ;;  %61 = vperm.xlu0 %3072, %v52_v1  }
   0x3   :  { %12 = vsyncpa [#allocation3], 0  ;;  %v55_v4 = vld [vmem:[%s4022_s0 + $0x18] sm:$0xff]  ;;  %v53_v5 = vld [vmem:[%s4022_s0 + $0x8] sm:$0xff]  ;;  %2781 = vmatprep.subr.mxu0 %v3232_v3  ;;  %2801 = vmatprep.subr.mxu1 %v3232_v3  ;;  %v49_v10 = vlaneseq  ;;  %vm112_vm0 = vcmask 261120   ;;  %s3233_s17 = smov 96  }
   0x4   :  { %2782 = vmatpush3.msra.mxu0 %v3232_v3  ;;  %v57_v6 = vld [vmem:[%s4022_s0 + $0x28] sm:$0xff]  ;;  %v56_v7 = vld [vmem:[%s4022_s0 + $0x20] sm:$0xff]  ;;  %v59_v8 = vld [vmem:[%s4022_s0 + $0x38] sm:$0xff]  ;;  %vm3234_vm9 = vmmov 0   ;;  %s3235_s20 = smov 32   ;;  %vm274_vm10 = vcmask 523264  }
   0x5   :  { %2783 = vmatprep.subr.mxu0 %v3232_v3  ;;  %v58_v9 = vld [vmem:[%s4022_s0 + $0x30] sm:$0xff]  ;;  %v3315_v11 = vand.u32 127, %v49_v10  ;;  %2817 = vmatprep.mubr.msk.f32.mxu1 %vm3234_vm9, %v3232_v3  ;;  %v3378_v36 = vld [vmem:[%s4023_s1] sm:$0xff]  ;;  %vm352_vm11 = vcmask 64512   ;;  %v3408_v48 = vld [vmem:[%s4028_s6 + $0x8] sm:$0xff]  ;;  %s3236_s16 = smov 64  }
   0x6   :  { %70 = vperm.xlu1 %3073, %v55_v4   ;;  %64 = vperm.xlu0 %3072, %v53_v5   ;;  %v3393_v44 = vld [vmem:[%s4027_s5] sm:$0xff]  ;;  %v3413_v49 = vld [vmem:[%s4028_s6 + $0x10] sm:$0xff]  ;;  %v3423_v50 = vld [vmem:[%s4028_s6 + $0x18] sm:$0xff]  ;;  %vm883_vm13 = vcmask 785408   ;;  %s3237_s30 = smov [#allocation2]  }
   0x7   :  { %2784 = vmatpush3.msra.mxu0 %v3232_v3  ;;  %v3399_v46 = vld [vmem:[%s4028_s6] sm:$0xff]  ;;  %v3437_v52 = vld [vmem:[%s4028_s6 + $0x28] sm:$0xff]  ;;  %v3442_v53 = vld [vmem:[%s4028_s6 + $0x30] sm:$0xff]  ;;  %s2493_s8 = sshll.u32 %s3237_s30, 4  ;;  %s2494_s8 = int_to_ptr.vmem [resolvable:$true] %s2493_s8 }
   0x8   :  { %2785 = vmatprep.subr.mxu0 %v3232_v3  ;;  %v3428_v51 = vld [vmem:[%s4028_s6 + $0x20] sm:$0xff]  ;;  %v3451_v54 = vld [vmem:[%s4028_s6 + $0x38] sm:$0xff]  ;;  %p3214_p1 = scmp.lt.s32.totalorder %s2494_s8, %s2494_s8 }
   0x9   :  { %2786 = vmatpush3.msra.mxu0 %v3232_v3 }
   0xa   :  { %76 = vperm.xlu1 %3073, %v57_v6   ;;  %73 = vperm.xlu0 %3072, %v56_v7  }
   0xb   :  { %2787 = vmatprep.subr.mxu0 %v3232_v3 }
   0xc   :  { %2788 = vmatpush3.msra.mxu0 %v3232_v3 }
   0xd   :  { %2834 = vmatprep.subr.mxu0 %v3232_v3 }
   0xe   :  { %82 = vperm.xlu1 %3073, %v59_v8   ;;  %79 = vperm.xlu0 %3072, %v58_v9  }
  0x7d   :  { %v68_v12 = vpop.permute.xlu1 %67  ;;  %v62_v13 = vpop.permute.xlu0 %61 }
  0x7e   :  { %vm84_vm1 = vcmp.eq.s32.totalorder %v3315_v11, %v62_v13  ;;  %vm86_vm2 = vcmp.eq.s32.totalorder %v3315_v11, %v68_v12 }
  0x7f   :  { %v2504_v14 = vsel %vm84_vm1, 1.0, %v3232_v3  ;;  %v2506_v17 = vsel %vm86_vm2, 1.0, %v3232_v3 }
  0x80   :  { %2789 = vmatprep.mubr.msk.f32.mxu0 %vm112_vm0, %v2504_v14 }
  0x81   :  { %v71_v15 = vpop.permute.xlu1 %70  ;;  %v65_v16 = vpop.permute.xlu0 %64 }
  0x82   :  { %vm85_vm3 = vcmp.eq.s32.totalorder %v3315_v11, %v65_v16  ;;  %vm87_vm4 = vcmp.eq.s32.totalorder %v3315_v11, %v71_v15 }
  0x83   :  { %v2505_v18 = vsel %vm85_vm3, 1.0, %v3232_v3  ;;  %v2507_v21 = vsel %vm87_vm4, 1.0, %v3232_v3 }
  0x84   :  { %2790 = vmatmul.mubr.msk.f32.vlgmr.msra.gmra.mxu0 %vm112_vm0, %v2505_v18 }
  0x85   :  { %v77_v19 = vpop.permute.xlu1 %76  ;;  %v74_v20 = vpop.permute.xlu0 %73  ;;  %2792 = vmatprep.mubr.msk.f32.mxu0 %vm112_vm0, %v2506_v17 }
  0x86   :  { %vm88_vm5 = vcmp.eq.s32.totalorder %v3315_v11, %v74_v20  ;;  %vm89_vm6 = vcmp.eq.s32.totalorder %v3315_v11, %v77_v19 }
  0x87   :  { %v2508_v22 = vsel %vm88_vm5, 1.0, %v3232_v3  ;;  %v2509_v25 = vsel %vm89_vm6, 1.0, %v3232_v3 }
  0x88   :  { %2793 = vmatmul.mubr.msk.f32.gmra.mxu0 %vm112_vm0, %v2507_v21 }
  0x89   :  { %v83_v23 = vpop.permute.xlu1 %82  ;;  %v80_v24 = vpop.permute.xlu0 %79  ;;  %2795 = vmatprep.mubr.msk.f32.mxu0 %vm112_vm0, %v2508_v22 }
  0x8a   :  { %vm90_vm7 = vcmp.eq.s32.totalorder %v3315_v11, %v80_v24  ;;  %vm91_vm8 = vcmp.eq.s32.totalorder %v3315_v11, %v83_v23 }
  0x8b   :  { %v2510_v26 = vsel %vm90_vm7, 1.0, %v3232_v3  ;;  %v2511_v27 = vsel %vm91_vm8, 1.0, %v3232_v3 }
  0x8c   :  { %2796 = vmatmul.mubr.msk.f32.gmra.mxu0 %vm112_vm0, %v2509_v25 }
  0x8d   :  { %2798 = vmatprep.mubr.msk.f32.mxu0 %vm112_vm0, %v2510_v26 }
  0x90   :  { %2799 = vmatmul.mubr.msk.f32.gmra.mxu0 %vm112_vm0, %v2511_v27 }
  0x91   :  { %2850 = vmatprep.mubr.msk.f32.mxu0 %vm3234_vm9, %v3232_v3 }
 0x144   :  { %v3341_v28 = vpop.f32.mrf.mxu0 }
 0x146   :  { %v3343_v29 = vpop.f32.mrf.mxu0 }
 0x148   :  { %v3345_v30 = vpop.f32.mrf.mxu0 }
 0x14a   :  { %v3347_v31 = vpop.f32.mrf.mxu0 }
 0x14c   :  { %v3349_v32 = vpop.f32.mrf.mxu0 }
 0x14e   :  { %v3351_v33 = vpop.f32.mrf.mxu0 }
 0x150   :  { %v3353_v34 = vpop.f32.mrf.mxu0 }
 0x151   :  { %264 = vrot.lane.b32.xlu0 %v3353_v34, %s3233_s17 }
 0x152   :  { %v3357_v35 = vpop.f32.mrf.mxu0 }
 0x153   :  { %262 = vrot.lane.b32.xlu1 %v3357_v35, %s3233_s17 }
 0x155   :  { %260 = vrot.lane.b32.xlu0 %v3349_v32, %s3233_s17 }
 0x157   :  { %258 = vrot.lane.b32.xlu1 %v3351_v33, %s3233_s17 }
 0x159   :  { %256 = vrot.lane.b32.xlu0 %v3345_v30, %s3233_s17 }
 0x15b   :  { %254 = vrot.lane.b32.xlu1 %v3347_v31, %s3233_s17 }
 0x15d   :  { %252 = vrot.lane.b32.xlu0 %v3341_v28, %s3233_s17 }
 0x15f   :  { %250 = vrot.lane.b32.xlu1 %v3343_v29, %s3233_s17 }
 0x161   :  { %349 = vrot.lane.b32.xlu0 %v3378_v36, %s3235_s20 }
 0x1c3   :  { %v265_v37 = vpop.permute.xlu0 %264 }
 0x1c4   :  { %2802 = vmatpush3.msra.mxu1 %v265_v37 }
 0x1c5   :  { %2803 = vmatprep.subr.mxu1 %v3232_v3  ;;  %v263_v38 = vpop.permute.xlu1 %262 }
 0x1c6   :  { %2804 = vmatpush3.msra.mxu1 %v263_v38 }
 0x1c7   :  { %v261_v39 = vpop.permute.xlu0 %260  ;;  %2805 = vmatprep.subr.mxu1 %v3232_v3 }
 0x1c8   :  { %2806 = vmatpush3.msra.mxu1 %v261_v39 }
 0x1c9   :  { %2807 = vmatprep.subr.mxu1 %v3232_v3  ;;  %v259_v40 = vpop.permute.xlu1 %258 }
 0x1ca   :  { %2808 = vmatpush3.msra.mxu1 %v259_v40 }
 0x1cb   :  { %v257_v41 = vpop.permute.xlu0 %256  ;;  %2809 = vmatprep.subr.mxu1 %v3232_v3 }
 0x1cc   :  { %2810 = vmatpush3.msra.mxu1 %v257_v41 }
 0x1cd   :  { %2811 = vmatprep.subr.mxu1 %v3232_v3  ;;  %v255_v42 = vpop.permute.xlu1 %254 }
 0x1ce   :  { %2812 = vmatpush3.msra.mxu1 %v255_v42 }
 0x1cf   :  { %v253_v43 = vpop.permute.xlu0 %252  ;;  %2813 = vmatprep.subr.mxu1 %v3232_v3 }
 0x1d0   :  { %2814 = vmatpush3.msra.mxu1 %v253_v43 }
 0x1d1   :  { %2815 = vmatprep.subr.mxu1 %v3232_v3  ;;  %v251_v45 = vpop.permute.xlu1 %250 }
 0x1d2   :  { %2816 = vmatpush3.msra.mxu1 %v251_v45 }
 0x1d3   :  { %v350_v47 = vpop.permute.xlu0 %349  ;;  %2818 = vmatmul.mubr.msk.f32.vlgmr.msra.gmra.mxu1 %vm274_vm10, %v3393_v44 }
 0x1d4   :  { %2820 = vmatprep.subr.mxu1 %v350_v47  ;;  %2822 = vmatprep.mubr.msk.f32.mxu1 %vm352_vm11, %v3399_v46 }
 0x1d5   :  { %2821 = vmatpush3.msra.mxu1 %v350_v47 }
 0x1d6   :  { %2864 = vmatprep.subr.mxu1 %v3232_v3 }
 0x1d7   :  { %2823 = vmatmul.mubr.msk.f32.vlgmr.msra.gmra.mxu1 %vm352_vm11, %v3408_v48 }
 0x1d8   :  { %2825 = vmatprep.mubr.msk.f32.mxu1 %vm352_vm11, %v3413_v49 }
 0x1db   :  { %2826 = vmatmul.mubr.msk.f32.gmra.mxu1 %vm352_vm11, %v3423_v50 }
 0x1dc   :  { %2828 = vmatprep.mubr.msk.f32.mxu1 %vm352_vm11, %v3428_v51 }
 0x1df   :  { %2829 = vmatmul.mubr.msk.f32.gmra.mxu1 %vm352_vm11, %v3437_v52 }
 0x1e0   :  { %2831 = vmatprep.mubr.msk.f32.mxu1 %vm352_vm11, %v3442_v53 }
 0x1e3   :  { %2832 = vmatmul.mubr.msk.f32.gmra.mxu1 %vm352_vm11, %v3451_v54 }
 0x1e4   :  { %2872 = vmatprep.mubr.msk.f32.mxu1 %vm3234_vm9, %v3232_v3 }
 0x293   :  { %v3457_v55 = vpop.f32.mrf.mxu1 }
 0x295   :  { %v2819_v56 = vpop.f32.mrf.mxu1 }
 0x297   :  { %v2824_v57 = vpop.f32.mrf.mxu1 }
 0x299   :  { %v443_v58 = vpop.f32.mrf.mxu1 }
 0x29b   :  { %v2827_v59 = vpop.f32.mrf.mxu1 }
 0x29d   :  { %v453_v60 = vpop.f32.mrf.mxu1 }
 0x29f   :  { %v2830_v61 = vpop.f32.mrf.mxu1 }
 0x2a1   :  { %v463_v62 = vpop.f32.mrf.mxu1 }
 0x2a3   :  { %v2833_v63 = vpop.f32.mrf.mxu1 }
 0x2a4   :  { %504 = vrot.lane.b32.xlu1 %v2833_v63, %s3236_s16 }
 0x2a5   :  { %v473_v0 = vpop.f32.mrf.mxu1 }
 0x2a6   :  { %502 = vrot.lane.b32.xlu0 %v473_v0, %s3236_s16 }
 0x2a8   :  { %500 = vrot.lane.b32.xlu1 %v2830_v61, %s3236_s16 }
 0x2aa   :  { %498 = vrot.lane.b32.xlu0 %v463_v62, %s3236_s16 }
 0x2ac   :  { %496 = vrot.lane.b32.xlu1 %v2827_v59, %s3236_s16 }
 0x2ae   :  { %494 = vrot.lane.b32.xlu0 %v453_v60, %s3236_s16 }
 0x2b0   :  { %492 = vrot.lane.b32.xlu1 %v2824_v57, %s3236_s16 }
 0x2b2   :  { %490 = vrot.lane.b32.xlu0 %v443_v58, %s3236_s16 }
 0x2b4   :  { %584 = vrot.lane.b32.xlu1 %v3353_v34, %s3236_s16 }
 0x2b6   :  { %582 = vrot.lane.b32.xlu0 %v3357_v35, %s3236_s16 }
 0x2b8   :  { %580 = vrot.lane.b32.xlu1 %v3349_v32, %s3236_s16 }
 0x2ba   :  { %578 = vrot.lane.b32.xlu0 %v3351_v33, %s3236_s16 }
 0x2bc   :  { %576 = vrot.lane.b32.xlu1 %v3345_v30, %s3236_s16 }
 0x2be   :  { %574 = vrot.lane.b32.xlu0 %v3347_v31, %s3236_s16 }
 0x2c0   :  { %572 = vrot.lane.b32.xlu1 %v3341_v28, %s3236_s16 }
 0x2c2   :  { %570 = vrot.lane.b32.xlu0 %v3343_v29, %s3236_s16 }
 0x316   :  { %v505_v1 = vpop.permute.xlu1 %504 }
 0x317   :  { %v521_v2 = vadd.f32 %v3353_v34, %v505_v1 }
 0x318   :  { %v503_v4 = vpop.permute.xlu0 %502 }
 0x319   :  { %v2536_v5 = vmul.f32 -1.442695, %v521_v2  ;;  %v520_v6 = vadd.f32 %v503_v4, %v3357_v35 }
 0x31a   :  { %v501_v7 = vpop.permute.xlu1 %500 }
 0x31b   :  { %3074 = vpow2.f32 %v2536_v5  ;;  %v2535_v8 = vmul.f32 -1.442695, %v520_v6  ;;  %v519_v9 = vadd.f32 %v3349_v32, %v501_v7 }
 0x31c   :  { %v499_v10 = vpop.permute.xlu0 %498 }
 0x31d   :  { %3076 = vpow2.f32 %v2535_v8  ;;  %v2534_v12 = vmul.f32 -1.442695, %v519_v9  ;;  %v518_v13 = vadd.f32 %v499_v10, %v3351_v33 }
 0x31e   :  { %v497_v14 = vpop.permute.xlu1 %496 }
 0x31f   :  { %3078 = vpow2.f32 %v2534_v12  ;;  %v2533_v15 = vmul.f32 -1.442695, %v518_v13  ;;  %v517_v16 = vadd.f32 %v3345_v30, %v497_v14 }
 0x320   :  { %v495_v17 = vpop.permute.xlu0 %494 }
 0x321   :  { %3080 = vpow2.f32 %v2533_v15  ;;  %v2532_v18 = vmul.f32 -1.442695, %v517_v16  ;;  %v516_v19 = vadd.f32 %v495_v17, %v3347_v31 }
 0x322   :  { %v493_v20 = vpop.permute.xlu1 %492 }
 0x323   :  { %3082 = vpow2.f32 %v2532_v18  ;;  %v2531_v21 = vmul.f32 -1.442695, %v516_v19  ;;  %v515_v22 = vadd.f32 %v3341_v28, %v493_v20 }
 0x324   :  { %v491_v23 = vpop.permute.xlu0 %490 }
 0x325   :  { %3084 = vpow2.f32 %v2531_v21  ;;  %v2530_v24 = vmul.f32 -1.442695, %v515_v22  ;;  %v514_v25 = vadd.f32 %v491_v23, %v3343_v29 }
 0x326   :  { %v585_v40 = vpop.permute.xlu1 %584 }
 0x327   :  { %3086 = vpow2.f32 %v2530_v24  ;;  %v2529_v26 = vmul.f32 -1.442695, %v514_v25  ;;  %v3509_v24 = vld [vmem:[%s4024_s2 + $0x18] sm:$0xff]  ;;  %v3517_v25 = vld [vmem:[%s4024_s2 + $0x10] sm:$0xff] }
 0x328   :  { %v3075_v27 = vpop.eup %3074  ;;  %v583_v42 = vpop.permute.xlu0 %582 }
 0x329   :  { %v553_v32 = vadd.f32 1.0, %v3075_v27  ;;  %3088 = vpow2.f32 %v2529_v26  ;;  %v3526_v26 = vld [vmem:[%s4024_s2 + $0x8] sm:$0xff]  ;;  %v3533_v27 = vld [vmem:[%s4024_s2] sm:$0xff] }
 0x32a   :  { %v3077_v30 = vpop.eup %3076  ;;  %v581_v57 = vpop.permute.xlu1 %580 }
 0x32b   :  { %3090 = vrcp.f32 %v553_v32  ;;  %v552_v33 = vadd.f32 1.0, %v3077_v30 }
 0x32c   :  { %v3079_v34 = vpop.eup %3078  ;;  %v579_v60 = vpop.permute.xlu0 %578 }
 0x32d   :  { %3092 = vrcp.f32 %v552_v33  ;;  %v551_v31 = vadd.f32 1.0, %v3079_v34 }
 0x32e   :  { %v3081_v35 = vpop.eup %3080  ;;  %v577_v1 = vpop.permute.xlu1 %576 }
 0x32f   :  { %3094 = vrcp.f32 %v551_v31  ;;  %v550_v37 = vadd.f32 1.0, %v3081_v35 }
 0x330   :  { %v3083_v28 = vpop.eup %3082  ;;  %v575_v5 = vpop.permute.xlu0 %574 }
 0x331   :  { %3096 = vrcp.f32 %v550_v37  ;;  %v549_v38 = vadd.f32 1.0, %v3083_v28 }
 0x332   :  { %v3085_v39 = vpop.eup %3084  ;;  %v573_v10 = vpop.permute.xlu1 %572 }
 0x333   :  { %3098 = vrcp.f32 %v549_v38  ;;  %v548_v29 = vadd.f32 1.0, %v3085_v39 }
 0x334   :  { %v3087_v41 = vpop.eup %3086  ;;  %v571_v14 = vpop.permute.xlu0 %570 }
 0x335   :  { %3100 = vrcp.f32 %v548_v29  ;;  %v547_v43 = vadd.f32 1.0, %v3087_v41  ;;  %v3557_v41 = vld [vmem:[%s4025_s3 + $0x10] sm:$0xff] }
 0x336   :  { %v3089_v45 = vpop.eup %3088 }
 0x337   :  { %3102 = vrcp.f32 %v547_v43  ;;  %v546_v47 = vadd.f32 1.0, %v3089_v45  ;;  %v3571_v43 = vld [vmem:[%s4025_s3] sm:$0xff] }
 0x338   :  { %v3091_v56 = vpop.eup %3090 }
 0x339   :  { %3104 = vrcp.f32 %v546_v47  ;;  %v601_v58 = vmul.f32 %v3091_v56, %v585_v40  ;;  %v2543_v56 = vld [vmem:[%s4022_s0 + $0x40] sm:$0xff] }
 0x33a   :  { %v3093_v59 = vpop.eup %3092 }
 0x33b   :  { %v600_v61 = vmul.f32 %v3093_v59, %v583_v42  ;;  %624 = vrot.lane.b32.xlu1 %v601_v58, %s3236_s16  ;;  %v3564_v42 = vld [vmem:[%s4025_s3 + $0x8] sm:$0xff]  ;;  %v2547_v58 = vld [vmem:[%s4022_s0 + $0x60] sm:$0xff]  ;;  %v2549_v59 = vld [vmem:[%s4022_s0 + $0x70] sm:$0xff] }
 0x33c   :  { %v3095_v62 = vpop.eup %3094 }
 0x33d   :  { %v599_v63 = vmul.f32 %v3095_v62, %v581_v57  ;;  %622 = vrot.lane.b32.xlu0 %v600_v61, %s3236_s16  ;;  %v2545_v57 = vld [vmem:[%s4022_s0 + $0x50] sm:$0xff] }
 0x33e   :  { %v3097_v0 = vpop.eup %3096 }
 0x33f   :  { %v598_v2 = vmul.f32 %v3097_v0, %v579_v60  ;;  %620 = vrot.lane.b32.xlu1 %v599_v63, %s3236_s16  ;;  %v3599_v63 = vld [vmem:[%s4023_s1 + $0x8] sm:$0xff]  ;;  %v3606_v0 = vld [vmem:[%s4026_s4] ss:$0 sm:$0xff] }
 0x340   :  { %v3099_v4 = vpop.eup %3098 }
 0x341   :  { %v597_v6 = vmul.f32 %v3099_v4, %v577_v1  ;;  %618 = vrot.lane.b32.xlu0 %v598_v2, %s3236_s16 }
 0x342   :  { %v3101_v7 = vpop.eup %3100 }
 0x343   :  { %v596_v8 = vmul.f32 %v3101_v7, %v575_v5  ;;  %616 = vrot.lane.b32.xlu1 %v597_v6, %s3236_s16  ;;  %v2544_v5 = vld [vmem:[%s4022_s0 + $0x48] sm:$0xff]  ;;  %v2546_v6 = vld [vmem:[%s4022_s0 + $0x58] sm:$0xff] }
 0x344   :  { %v3103_v9 = vpop.eup %3102  ;;  %v2548_v7 = vld [vmem:[%s4022_s0 + $0x68] sm:$0xff] }
 0x345   :  { %v595_v12 = vmul.f32 %v3103_v9, %v573_v10  ;;  %614 = vrot.lane.b32.xlu0 %v596_v8, %s3236_s16  ;;  %v2550_v8 = vld [vmem:[%s4022_s0 + $0x78] sm:$0xff] }
 0x346   :  { %v3105_v13 = vpop.eup %3104 }
 0x347   :  { %v594_v15 = vmul.f32 %v3105_v13, %v571_v14  ;;  %612 = vrot.lane.b32.xlu1 %v595_v12, %s3236_s16 }
 0x349   :  { %610 = vrot.lane.b32.xlu0 %v594_v15, %s3236_s16 }
 0x3ad   :  { %v625_v16 = vpop.permute.xlu1 %624 }
 0x3ae   :  { %2835 = vmatpush3.msra.mxu0 %v625_v16 }
 0x3af   :  { %2836 = vmatprep.subr.mxu0 %v3232_v3  ;;  %v623_v17 = vpop.permute.xlu0 %622 }
 0x3b0   :  { %2837 = vmatpush3.msra.mxu0 %v623_v17 }
 0x3b1   :  { %v621_v18 = vpop.permute.xlu1 %620  ;;  %2838 = vmatprep.subr.mxu0 %v3232_v3 }
 0x3b2   :  { %2839 = vmatpush3.msra.mxu0 %v621_v18 }
 0x3b3   :  { %2840 = vmatprep.subr.mxu0 %v3232_v3  ;;  %v619_v19 = vpop.permute.xlu0 %618 }
 0x3b4   :  { %2841 = vmatpush3.msra.mxu0 %v619_v19 }
 0x3b5   :  { %v617_v20 = vpop.permute.xlu1 %616  ;;  %2842 = vmatprep.subr.mxu0 %v3232_v3 }
 0x3b6   :  { %2843 = vmatpush3.msra.mxu0 %v617_v20 }
 0x3b7   :  { %2844 = vmatprep.subr.mxu0 %v3232_v3  ;;  %v615_v21 = vpop.permute.xlu0 %614 }
 0x3b8   :  { %2845 = vmatpush3.msra.mxu0 %v615_v21 }
 0x3b9   :  { %v613_v22 = vpop.permute.xlu1 %612  ;;  %2846 = vmatprep.subr.mxu0 %v3232_v3 }
 0x3ba   :  { %2847 = vmatpush3.msra.mxu0 %v613_v22 }
 0x3bb   :  { %2848 = vmatprep.subr.mxu0 %v3232_v3  ;;  %v611_v23 = vpop.permute.xlu0 %610 }
 0x3bc   :  { %2849 = vmatpush3.msra.mxu0 %v611_v23 }
 0x3bd   :  { %2853 = vmatprep.subr.mxu0 %v3232_v3  ;;  %2851 = vmatmul.mubr.msk.f32.vlgmr.msra.gmra.mxu0 %vm274_vm10, %v3393_v44 }
 0x3be   :  { %2854 = vmatpush3.msra.mxu0 %v3509_v24  ;;  %2861 = vmatprep.mubr.msk.f32.mxu0 %vm3234_vm9, %v3232_v3 }
 0x3bf   :  { %2855 = vmatprep.subr.mxu0 %v3232_v3 }
 0x3c0   :  { %2856 = vmatpush3.msra.mxu0 %v3517_v25 }
 0x3c1   :  { %2857 = vmatprep.subr.mxu0 %v3232_v3 }
 0x3c2   :  { %2858 = vmatpush3.msra.mxu0 %v3526_v26 }
 0x3c3   :  { %2859 = vmatprep.subr.mxu0 %v3232_v3 }
 0x3c4   :  { %2860 = vmatpush3.msra.mxu0 %v3533_v27 }
 0x3c5   :  { %2862 = vmatmul.mubr.msk.f32.vlgmr.msra.gmra.mxu0 %vm112_vm0, %v3457_v55  ;;  %2875 = vmatprep.subr.mxu0 %v3232_v3 }
 0x3c6   :  { %2876 = vmatpush3.msra.mxu0 %v3232_v3 }
 0x3c7   :  { %2877 = vmatprep.subr.mxu0 %v3232_v3 }
 0x3c8   :  { %2878 = vmatpush3.msra.mxu0 %v3232_v3 }
 0x3c9   :  { %2879 = vmatprep.subr.mxu0 %v3232_v3 }
 0x3ca   :  { %2880 = vmatpush3.msra.mxu0 %v3232_v3 }
 0x47d   :  { %v700_v32 = vpop.f32.mrf.mxu0 }
 0x47f   :  { %v2852_v30 = vpop.f32.mrf.mxu0 }
 0x485   :  { %v773_v33 = vpop.f32.mrf.mxu0 }
 0x486   :  { %v777_v34 = vadd.f32 %v773_v33, %v3378_v36  ;;  %v3552_v36 = vld [vmem:[%s4025_s3 + $0x18] sm:$0xff] }
 0x487   :  { %v2863_v31 = vpop.f32.mrf.mxu0  ;;  %2865 = vmatpush3.msra.mxu1 %v3552_v36 }
 0x488   :  { %v2539_v35 = vmul.f32 -1.442695, %v777_v34  ;;  %2866 = vmatprep.subr.mxu1 %v3232_v3 }
 0x489   :  { %2867 = vmatpush3.msra.mxu1 %v3557_v41 }
 0x48a   :  { %3106 = vpow2.f32 %v2539_v35  ;;  %2868 = vmatprep.subr.mxu1 %v3232_v3 }
 0x48b   :  { %2869 = vmatpush3.msra.mxu1 %v3564_v42 }
 0x48c   :  { %2870 = vmatprep.subr.mxu1 %v3232_v3 }
 0x48d   :  { %2871 = vmatpush3.msra.mxu1 %v3571_v43 }
 0x48e   :  { %2895 = vmatprep.subr.mxu1 %v3232_v3 }
 0x497   :  { %v3107_v55 = vpop.eup %3106 }
 0x498   :  { %v781_v37 = vadd.f32 1.0, %v3107_v55 }
 0x49a   :  { %3108 = vrcp.f32 %v781_v37 }
 0x4a7   :  { %v3109_v28 = vpop.eup %3108 }
 0x4a8   :  { %785 = vrot.lane.b32.xlu1 %v3109_v28, %s3236_s16 }
 0x51a   :  { %v786_v38 = vpop.permute.xlu1 %785 }
 0x51b   :  { %v788_v39 = vmul.f32 %v3109_v28, %v786_v38 }
 0x51d   :  { %v789_v40 = vadd.f32 %v788_v39, %v700_v32 }
 0x51f   :  { %3110 = vtanh.f32 %v789_v40 }
 0x52c   :  { %v3111_v29 = vpop.eup %3110 }
 0x52d   :  { %792 = vrot.lane.b32.xlu0 %v3111_v29, %s3235_s20 }
 0x59f   :  { %v793_v45 = vpop.permute.xlu0 %792 }
 0x5a0   :  { %v795_v47 = vmul.f32 %v3109_v28, %v793_v45 }
 0x5a2   :  { %803 = vrot.lane.b32.xlu1 %v795_v47, %s3233_s17  ;;  %v881_v14 = vsel %vm112_vm0, %v789_v40, %v795_v47 }
 0x5a6   :  { %898 = vperm.xlu1 %3073, %v2543_v56  }
 0x5aa   :  { %904 = vperm.xlu1 %3073, %v2545_v57  }
 0x5ae   :  { %910 = vperm.xlu1 %3073, %v2547_v58  }
 0x5b2   :  { %916 = vperm.xlu1 %3073, %v2549_v59  }
 0x5b6   :  { %1181 = vrot.lane.b32.xlu1 %v3599_v63, %s3235_s20 }
 0x614   :  { %v804_v60 = vpop.permute.xlu1 %803 }
 0x615   :  { %2873 = vmatmul.mubr.msk.f32.vlgmr.msra.gmra.mxu1 %vm112_vm0, %v804_v60 }
 0x616   :  { %2911 = vmatprep.mubr.msk.f32.mxu1 %vm3234_vm9, %v3232_v3 }
 0x621   :  { %v899_v61 = vpop.permute.xlu1 %898 }
 0x622   :  { %vm921_vm12 = vcmp.eq.s32.totalorder %v3315_v11, %v899_v61 }
 0x623   :  { %v2551_v62 = vsel %vm921_vm12, 1.0, %v3232_v3 }
 0x624   :  { %2883 = vmatprep.mubr.msk.f32.mxu0 %vm112_vm0, %v2551_v62 }
 0x625   :  { %v905_v9 = vpop.permute.xlu1 %904 }
 0x626   :  { %vm923_vm14 = vcmp.eq.s32.totalorder %v3315_v11, %v905_v9 }
 0x627   :  { %v2553_v20 = vsel %vm923_vm14, 1.0, %v3232_v3 }
 0x629   :  { %v911_v10 = vpop.permute.xlu1 %910 }
 0x62a   :  { %vm925_vm1 = vcmp.eq.s32.totalorder %v3315_v11, %v911_v10 }
 0x62b   :  { %v2555_v23 = vsel %vm925_vm1, 1.0, %v3232_v3 }
 0x62d   :  { %v917_v12 = vpop.permute.xlu1 %916 }
 0x62e   :  { %vm927_vm3 = vcmp.eq.s32.totalorder %v3315_v11, %v917_v12 }
 0x62f   :  { %v2557_v33 = vsel %vm927_vm3, 1.0, %v3232_v3 }
 0x631   :  { %v1182_v17 = vpop.permute.xlu1 %1181 }
 0x6d5   :  { %v873_v1 = vpop.f32.mrf.mxu1 }
 0x6d6   :  { %v874_v2 = vadd.f32 %v3606_v0, %v873_v1 }
 0x6d7   :  { %v2874_v4 = vpop.f32.mrf.mxu1 }
 0x6d8   :  { %878 = vrot.lane.b32.xlu0 %v874_v2, %s3236_s16 }
 0x6dc   :  { %901 = vperm.xlu0 %3072, %v2544_v5  }
 0x6e0   :  { %907 = vperm.xlu0 %3072, %v2546_v6  }
 0x6e4   :  { %913 = vperm.xlu0 %3072, %v2548_v7  }
 0x6e8   :  { %919 = vperm.xlu0 %3072, %v2550_v8  }
 0x74a   :  { %v879_v13 = vpop.permute.xlu0 %878 }
 0x74b   :  { %v3624_v15 = vsel %vm274_vm10, %v881_v14, %v879_v13 }
 0x74c   :  { %v884_v16 = vsel %vm883_vm13, %v3624_v15, 0.0  ;;  %3203 = vmatprep.subr.msk.mxu0 %vm883_vm13, %v3624_v15 }
 0x74d   :  { %885 = vst [vmem:[#allocation2] sm:$0xff] %v884_v16  ;;  %3204 = vmatpush3.msk.msra.mxu0 %vm883_vm13, %v3624_v15 }
 0x74e   :  { %2914 = vmatprep.subr.mxu0 %v1182_v17 }
 0x757   :  { %v902_v18 = vpop.permute.xlu0 %901 }
 0x758   :  { %vm922_vm15 = vcmp.eq.s32.totalorder %v3315_v11, %v902_v18 }
 0x759   :  { %v2552_v19 = vsel %vm922_vm15, 1.0, %v3232_v3 }
 0x75a   :  { %2884 = vmatmul.mubr.msk.f32.vlgmr.msra.gmra.mxu0 %vm112_vm0, %v2552_v19 }
 0x75b   :  { %v908_v21 = vpop.permute.xlu0 %907  ;;  %2886 = vmatprep.mubr.msk.f32.mxu0 %vm112_vm0, %v2553_v20  ;;  %2915 = vmatpush3.msra.mxu0 %v1182_v17 }
 0x75c   :  { %vm924_vm2 = vcmp.eq.s32.totalorder %v3315_v11, %v908_v21  ;;  %2947 = vmatprep.subr.mxu0 %v3232_v3 }
 0x75d   :  { %v2554_v22 = vsel %vm924_vm2, 1.0, %v3232_v3 }
 0x75e   :  { %2887 = vmatmul.mubr.msk.f32.gmra.mxu0 %vm112_vm0, %v2554_v22 }
 0x75f   :  { %v914_v32 = vpop.permute.xlu0 %913  ;;  %2889 = vmatprep.mubr.msk.f32.mxu0 %vm112_vm0, %v2555_v23 }
 0x760   :  { %vm926_vm4 = vcmp.eq.s32.totalorder %v3315_v11, %v914_v32 }
 0x761   :  { %v2556_v30 = vsel %vm926_vm4, 1.0, %v3232_v3 }
 0x762   :  { %2890 = vmatmul.mubr.msk.f32.gmra.mxu0 %vm112_vm0, %v2556_v30 }
 0x763   :  { %v920_v34 = vpop.permute.xlu0 %919  ;;  %2892 = vmatprep.mubr.msk.f32.mxu0 %vm112_vm0, %v2557_v33 }
 0x764   :  { %vm928_vm5 = vcmp.eq.s32.totalorder %v3315_v11, %v920_v34 }
 0x765   :  { %v2558_v31 = vsel %vm928_vm5, 1.0, %v3232_v3 }
 0x766   :  { %2893 = vmatmul.mubr.msk.f32.gmra.mxu0 %vm112_vm0, %v2558_v31 }
 0x767   :  { %2916 = vmatprep.mubr.msk.f32.mxu0 %vm352_vm11, %v3399_v46 }
 0x76a   :  { %2917 = vmatmul.mubr.msk.f32.vlgmr.msra.gmra.mxu0 %vm352_vm11, %v3408_v48 }
 0x76b   :  { %2919 = vmatprep.mubr.msk.f32.mxu0 %vm352_vm11, %v3413_v49  ;;  %2948 = vmatpush3.msra.mxu0 %v3509_v24 }
 0x76c   :  { %2949 = vmatprep.subr.mxu0 %v3232_v3 }
 0x76d   :  { %2950 = vmatpush3.msra.mxu0 %v3517_v25 }
 0x76e   :  { %2920 = vmatmul.mubr.msk.f32.gmra.mxu0 %vm352_vm11, %v3423_v50  ;;  %2951 = vmatprep.subr.mxu0 %v3232_v3 }
 0x76f   :  { %2922 = vmatprep.mubr.msk.f32.mxu0 %vm352_vm11, %v3428_v51  ;;  %2952 = vmatpush3.msra.mxu0 %v3526_v26 }
 0x770   :  { %2953 = vmatprep.subr.mxu0 %v3232_v3 }
 0x771   :  { %2954 = vmatpush3.msra.mxu0 %v3533_v27 }
 0x772   :  { %2923 = vmatmul.mubr.msk.f32.gmra.mxu0 %vm352_vm11, %v3437_v52  ;;  %2969 = vmatprep.subr.mxu0 %v3232_v3 }
 0x773   :  { %2925 = vmatprep.mubr.msk.f32.mxu0 %vm352_vm11, %v3442_v53 }
 0x776   :  { %2926 = vmatmul.mubr.msk.f32.gmra.mxu0 %vm352_vm11, %v3451_v54 }
 0x777   :  { %2955 = vmatprep.mubr.msk.f32.mxu0 %vm3234_vm9, %v3232_v3 }
 0x81a   :  { %v3680_v46 = vpop.f32.mrf.mxu0 }
 0x81c   :  { %v3682_v48 = vpop.f32.mrf.mxu0 }
 0x81e   :  { %v3684_v49 = vpop.f32.mrf.mxu0 }
 0x820   :  { %v3686_v50 = vpop.f32.mrf.mxu0 }
 0x822   :  { %v3688_v51 = vpop.f32.mrf.mxu0 }
 0x824   :  { %v3690_v52 = vpop.f32.mrf.mxu0 }
 0x826   :  { %v2894_v35 = vpop.f32.mrf.mxu0 }
 0x827   :  { %1100 = vrot.lane.b32.xlu0 %v2894_v35, %s3233_s17 }
 0x828   :  { %v1069_v53 = vpop.f32.mrf.mxu0 }
 0x829   :  { %1098 = vrot.lane.b32.xlu1 %v1069_v53, %s3233_s17 }
 0x82a   :  { %v2918_v54 = vpop.f32.mrf.mxu0 }
 0x82b   :  { %1096 = vrot.lane.b32.xlu0 %v3688_v51, %s3233_s17 }
 0x82c   :  { %v1250_v55 = vpop.f32.mrf.mxu0 }
 0x82d   :  { %1094 = vrot.lane.b32.xlu1 %v3690_v52, %s3233_s17 }
 0x82e   :  { %v2921_v37 = vpop.f32.mrf.mxu0 }
 0x82f   :  { %1092 = vrot.lane.b32.xlu0 %v3684_v49, %s3233_s17 }
 0x830   :  { %v1260_v28 = vpop.f32.mrf.mxu0 }
 0x831   :  { %1090 = vrot.lane.b32.xlu1 %v3686_v50, %s3233_s17 }
 0x832   :  { %v2924_v38 = vpop.f32.mrf.mxu0 }
 0x833   :  { %1088 = vrot.lane.b32.xlu0 %v3680_v46, %s3233_s17 }
 0x834   :  { %v1270_v39 = vpop.f32.mrf.mxu0 }
 0x835   :  { %1086 = vrot.lane.b32.xlu1 %v3682_v48, %s3233_s17 }
 0x836   :  { %v2927_v40 = vpop.f32.mrf.mxu0 }
 0x837   :  { %1311 = vrot.lane.b32.xlu0 %v2927_v40, %s3236_s16 }
 0x838   :  { %v1280_v29 = vpop.f32.mrf.mxu0 }
 0x839   :  { %1309 = vrot.lane.b32.xlu1 %v1280_v29, %s3236_s16 }
 0x83b   :  { %1307 = vrot.lane.b32.xlu0 %v2924_v38, %s3236_s16 }
 0x83d   :  { %1305 = vrot.lane.b32.xlu1 %v1270_v39, %s3236_s16 }
 0x83f   :  { %1303 = vrot.lane.b32.xlu0 %v2921_v37, %s3236_s16 }
 0x841   :  { %1301 = vrot.lane.b32.xlu1 %v1260_v28, %s3236_s16 }
 0x843   :  { %1299 = vrot.lane.b32.xlu0 %v2918_v54, %s3236_s16 }
 0x845   :  { %1297 = vrot.lane.b32.xlu1 %v1250_v55, %s3236_s16 }
 0x847   :  { %1391 = vrot.lane.b32.xlu0 %v2894_v35, %s3236_s16 }
 0x849   :  { %1389 = vrot.lane.b32.xlu1 %v1069_v53, %s3236_s16 }
 0x84b   :  { %1387 = vrot.lane.b32.xlu0 %v3688_v51, %s3236_s16 }
 0x84d   :  { %1385 = vrot.lane.b32.xlu1 %v3690_v52, %s3236_s16 }
 0x84f   :  { %1383 = vrot.lane.b32.xlu0 %v3684_v49, %s3236_s16 }
 0x851   :  { %1381 = vrot.lane.b32.xlu1 %v3686_v50, %s3236_s16 }
 0x853   :  { %1379 = vrot.lane.b32.xlu0 %v3680_v46, %s3236_s16 }
 0x855   :  { %1377 = vrot.lane.b32.xlu1 %v3682_v48, %s3236_s16 }
 0x899   :  { %v1101_v45 = vpop.permute.xlu0 %1100 }
 0x89a   :  { %2896 = vmatpush3.msra.mxu1 %v1101_v45 }
 0x89b   :  { %2897 = vmatprep.subr.mxu1 %v3232_v3  ;;  %v1099_v47 = vpop.permute.xlu1 %1098 }
 0x89c   :  { %2898 = vmatpush3.msra.mxu1 %v1099_v47 }
 0x89d   :  { %v1097_v56 = vpop.permute.xlu0 %1096  ;;  %2899 = vmatprep.subr.mxu1 %v3232_v3 }
 0x89e   :  { %2900 = vmatpush3.msra.mxu1 %v1097_v56 }
 0x89f   :  { %2901 = vmatprep.subr.mxu1 %v3232_v3  ;;  %v1095_v57 = vpop.permute.xlu1 %1094 }
 0x8a0   :  { %2902 = vmatpush3.msra.mxu1 %v1095_v57 }
 0x8a1   :  { %v1093_v58 = vpop.permute.xlu0 %1092  ;;  %2903 = vmatprep.subr.mxu1 %v3232_v3 }
 0x8a2   :  { %2904 = vmatpush3.msra.mxu1 %v1093_v58 }
 0x8a3   :  { %2905 = vmatprep.subr.mxu1 %v3232_v3  ;;  %v1091_v59 = vpop.permute.xlu1 %1090 }
 0x8a4   :  { %2906 = vmatpush3.msra.mxu1 %v1091_v59 }
 0x8a5   :  { %v1089_v60 = vpop.permute.xlu0 %1088  ;;  %2907 = vmatprep.subr.mxu1 %v3232_v3 }
 0x8a6   :  { %2908 = vmatpush3.msra.mxu1 %v1089_v60 }
 0x8a7   :  { %2909 = vmatprep.subr.mxu1 %v3232_v3  ;;  %v1087_v61 = vpop.permute.xlu1 %1086 }
 0x8a8   :  { %2910 = vmatpush3.msra.mxu1 %v1087_v61 }
 0x8a9   :  { %2912 = vmatmul.mubr.msk.f32.vlgmr.msra.gmra.mxu1 %vm274_vm10, %v3393_v44  ;;  %v1312_v62 = vpop.permute.xlu0 %1311  ;;  %2928 = vmatprep.subr.mxu1 %v3232_v3 }
 0x8aa   :  { %v1328_v1 = vadd.f32 %v2894_v35, %v1312_v62  ;;  %2944 = vmatprep.mubr.msk.f32.mxu1 %vm3234_vm9, %v3232_v3 }
 0x8ab   :  { %v1310_v2 = vpop.permute.xlu1 %1309 }
 0x8ac   :  { %v2583_v4 = vmul.f32 -1.442695, %v1328_v1  ;;  %v1327_v5 = vadd.f32 %v1310_v2, %v1069_v53 }
 0x8ad   :  { %v1308_v6 = vpop.permute.xlu0 %1307 }
 0x8ae   :  { %3112 = vpow2.f32 %v2583_v4  ;;  %v2582_v7 = vmul.f32 -1.442695, %v1327_v5  ;;  %v1326_v8 = vadd.f32 %v3688_v51, %v1308_v6 }
 0x8af   :  { %v1306_v9 = vpop.permute.xlu1 %1305 }
 0x8b0   :  { %3114 = vpow2.f32 %v2582_v7  ;;  %v2581_v10 = vmul.f32 -1.442695, %v1326_v8  ;;  %v1325_v12 = vadd.f32 %v1306_v9, %v3690_v52 }
 0x8b1   :  { %v1304_v13 = vpop.permute.xlu0 %1303 }
 0x8b2   :  { %3116 = vpow2.f32 %v2581_v10  ;;  %v2580_v14 = vmul.f32 -1.442695, %v1325_v12  ;;  %v1324_v16 = vadd.f32 %v3684_v49, %v1304_v13 }
 0x8b3   :  { %v1302_v17 = vpop.permute.xlu1 %1301 }
 0x8b4   :  { %3118 = vpow2.f32 %v2580_v14  ;;  %v2579_v3 = vmul.f32 -1.442695, %v1324_v16  ;;  %v1323_v18 = vadd.f32 %v1302_v17, %v3686_v50  ;;  %v3754_v17 = vld [vmem:[#allocation2 + $0x18] sm:$0xff] }
 0x8b5   :  { %v1300_v19 = vpop.permute.xlu0 %1299 }
 0x8b6   :  { %3120 = vpow2.f32 %v2579_v3  ;;  %v2578_v20 = vmul.f32 -1.442695, %v1323_v18  ;;  %v1322_v21 = vadd.f32 %v3680_v46, %v1300_v19 }
 0x8b7   :  { %v1298_v22 = vpop.permute.xlu1 %1297 }
 0x8b8   :  { %3122 = vpow2.f32 %v2578_v20  ;;  %v2577_v23 = vmul.f32 -1.442695, %v1322_v21  ;;  %v1321_v32 = vadd.f32 %v1298_v22, %v3682_v48 }
 0x8b9   :  { %v1392_v55 = vpop.permute.xlu0 %1391 }
 0x8ba   :  { %3124 = vpow2.f32 %v2577_v23  ;;  %v2576_v30 = vmul.f32 -1.442695, %v1321_v32 }
 0x8bb   :  { %v3113_v33 = vpop.eup %3112  ;;  %v1390_v28 = vpop.permute.xlu1 %1389 }
 0x8bc   :  { %v1360_v34 = vadd.f32 1.0, %v3113_v33  ;;  %3126 = vpow2.f32 %v2576_v30 }
 0x8bd   :  { %v3115_v31 = vpop.eup %3114  ;;  %v1388_v45 = vpop.permute.xlu0 %1387 }
 0x8be   :  { %3128 = vrcp.f32 %v1360_v34  ;;  %v1359_v49 = vadd.f32 1.0, %v3115_v31 }
 0x8bf   :  { %v3117_v51 = vpop.eup %3116  ;;  %v1386_v57 = vpop.permute.xlu1 %1385 }
 0x8c0   :  { %3130 = vrcp.f32 %v1359_v49  ;;  %v1358_v50 = vadd.f32 1.0, %v3117_v51 }
 0x8c1   :  { %v3119_v52 = vpop.eup %3118  ;;  %v1384_v62 = vpop.permute.xlu0 %1383 }
 0x8c2   :  { %3132 = vrcp.f32 %v1358_v50  ;;  %v1357_v35 = vadd.f32 1.0, %v3119_v52 }
 0x8c3   :  { %v3121_v46 = vpop.eup %3120  ;;  %v1382_v4 = vpop.permute.xlu1 %1381 }
 0x8c4   :  { %3134 = vrcp.f32 %v1357_v35  ;;  %v1356_v53 = vadd.f32 1.0, %v3121_v46 }
 0x8c5   :  { %v3123_v54 = vpop.eup %3122  ;;  %v1380_v9 = vpop.permute.xlu0 %1379 }
 0x8c6   :  { %3136 = vrcp.f32 %v1356_v53  ;;  %v1355_v48 = vadd.f32 1.0, %v3123_v54  ;;  %v2589_v53 = vld [vmem:[%s4022_s0 + $0x80] sm:$0xff]  ;;  %v2591_v54 = vld [vmem:[%s4022_s0 + $0x90] sm:$0xff] }
 0x8c7   :  { %v3125_v37 = vpop.eup %3124  ;;  %v1378_v13 = vpop.permute.xlu1 %1377 }
 0x8c8   :  { %3138 = vrcp.f32 %v1355_v48  ;;  %v1354_v38 = vadd.f32 1.0, %v3125_v37  ;;  %v2595_v48 = vld [vmem:[%s4022_s0 + $0xb0] sm:$0xff] }
 0x8c9   :  { %v3127_v39 = vpop.eup %3126 }
 0x8ca   :  { %3140 = vrcp.f32 %v1354_v38  ;;  %v1353_v40 = vadd.f32 1.0, %v3127_v39  ;;  %v3805_v39 = vld [vmem:[%s4023_s1 + $0x10] sm:$0xff] }
 0x8cb   :  { %v3129_v29 = vpop.eup %3128 }
 0x8cc   :  { %3142 = vrcp.f32 %v1353_v40  ;;  %v1408_v47 = vmul.f32 %v3129_v29, %v1392_v55  ;;  %v2593_v55 = vld [vmem:[%s4022_s0 + $0xa0] sm:$0xff] }
 0x8cd   :  { %v3131_v56 = vpop.eup %3130 }
 0x8ce   :  { %v1407_v58 = vmul.f32 %v3131_v56, %v1390_v28  ;;  %1431 = vrot.lane.b32.xlu0 %v1408_v47, %s3236_s16  ;;  %v2590_v47 = vld [vmem:[%s4022_s0 + $0x88] sm:$0xff]  ;;  %v2592_v56 = vld [vmem:[%s4022_s0 + $0x98] sm:$0xff] }
 0x8cf   :  { %v3133_v59 = vpop.eup %3132 }
 0x8d0   :  { %v1406_v60 = vmul.f32 %v3133_v59, %v1388_v45  ;;  %1429 = vrot.lane.b32.xlu1 %v1407_v58, %s3236_s16 }
 0x8d1   :  { %v3135_v61 = vpop.eup %3134 }
 0x8d2   :  { %v1405_v1 = vmul.f32 %v3135_v61, %v1386_v57  ;;  %1427 = vrot.lane.b32.xlu0 %v1406_v60, %s3236_s16  ;;  %v2594_v57 = vld [vmem:[%s4022_s0 + $0xa8] sm:$0xff] }
 0x8d3   :  { %v3137_v2 = vpop.eup %3136 }
 0x8d4   :  { %v1404_v5 = vmul.f32 %v3137_v2, %v1384_v62  ;;  %1425 = vrot.lane.b32.xlu1 %v1405_v1, %s3236_s16 }
 0x8d5   :  { %v3139_v6 = vpop.eup %3138 }
 0x8d6   :  { %v1403_v7 = vmul.f32 %v3139_v6, %v1382_v4  ;;  %1423 = vrot.lane.b32.xlu0 %v1404_v5, %s3236_s16 }
 0x8d7   :  { %v3141_v8 = vpop.eup %3140 }
 0x8d8   :  { %v1402_v10 = vmul.f32 %v3141_v8, %v1380_v9  ;;  %1421 = vrot.lane.b32.xlu1 %v1403_v7, %s3236_s16 }
 0x8d9   :  { %v3143_v12 = vpop.eup %3142 }
 0x8da   :  { %v1401_v14 = vmul.f32 %v3143_v12, %v1378_v13  ;;  %1419 = vrot.lane.b32.xlu0 %v1402_v10, %s3236_s16 }
 0x8dc   :  { %1417 = vrot.lane.b32.xlu1 %v1401_v14, %s3236_s16 }
 0x940   :  { %v1432_v16 = vpop.permute.xlu0 %1431 }
 0x941   :  { %2929 = vmatpush3.msra.mxu1 %v1432_v16 }
 0x942   :  { %2930 = vmatprep.subr.mxu1 %v3754_v17  ;;  %v1430_v3 = vpop.permute.xlu1 %1429 }
 0x943   :  { %2931 = vmatpush3.msra.mxu1 %v1430_v3  ;;  %v3189_v3 = vld [vmem:[%s4028_s6] sm:$0xff] }
 0x944   :  { %v1428_v18 = vpop.permute.xlu0 %1427  ;;  %2932 = vmatprep.subr.mxu1 %v3754_v17 }
 0x945   :  { %2933 = vmatpush3.msra.mxu1 %v1428_v18  ;;  %v3190_v18 = vld [vmem:[%s4028_s6 + $0x8] sm:$0xff] }
 0x946   :  { %2934 = vmatprep.subr.mxu1 %v3754_v17  ;;  %v1426_v19 = vpop.permute.xlu1 %1425 }
 0x947   :  { %2935 = vmatpush3.msra.mxu1 %v1426_v19  ;;  %v3192_v19 = vld [vmem:[%s4028_s6 + $0x18] sm:$0xff] }
 0x948   :  { %v1424_v20 = vpop.permute.xlu0 %1423  ;;  %2936 = vmatprep.subr.mxu1 %v3754_v17 }
 0x949   :  { %2937 = vmatpush3.msra.mxu1 %v1424_v20  ;;  %v3193_v20 = vld [vmem:[%s4028_s6 + $0x20] sm:$0xff] }
 0x94a   :  { %2938 = vmatprep.subr.mxu1 %v3754_v17  ;;  %v1422_v21 = vpop.permute.xlu1 %1421 }
 0x94b   :  { %2939 = vmatpush3.msra.mxu1 %v1422_v21 }
 0x94c   :  { %v1420_v22 = vpop.permute.xlu0 %1419  ;;  %2940 = vmatprep.subr.mxu1 %v3754_v17 }
 0x94d   :  { %2941 = vmatpush3.msra.mxu1 %v1420_v22 }
 0x94e   :  { %2942 = vmatprep.subr.mxu1 %v3754_v17  ;;  %v1418_v23 = vpop.permute.xlu1 %1417 }
 0x94f   :  { %2943 = vmatpush3.msra.mxu1 %v1418_v23 }
 0x950   :  { %2945 = vmatmul.mubr.msk.f32.vlgmr.msra.gmra.mxu1 %vm274_vm10, %v3393_v44  ;;  %2958 = vmatprep.subr.mxu1 %v3754_v17 }
 0x951   :  { %2959 = vmatpush3.msra.mxu1 %v3552_v36  ;;  %2966 = vmatprep.mubr.msk.f32.mxu1 %vm3234_vm9, %v3754_v17 }
 0x952   :  { %2960 = vmatprep.subr.mxu1 %v3754_v17 }
 0x953   :  { %2961 = vmatpush3.msra.mxu1 %v3557_v41 }
 0x954   :  { %2962 = vmatprep.subr.mxu1 %v3754_v17 }
 0x955   :  { %2963 = vmatpush3.msra.mxu1 %v3564_v42 }
 0x956   :  { %2964 = vmatprep.subr.mxu1 %v3754_v17 }
 0x957   :  { %2965 = vmatpush3.msra.mxu1 %v3571_v43 }
 0x958   :  { %2989 = vmatprep.subr.mxu1 %v3754_v17 }
 0x969   :  { %v1176_v44 = vpop.f32.mrf.mxu1 }
 0x96a   :  { %2956 = vmatmul.mubr.msk.f32.vlgmr.msra.gmra.mxu0 %vm112_vm0, %v1176_v44 }
 0x96b   :  { %v2913_v36 = vpop.f32.mrf.mxu1  ;;  %2970 = vmatpush3.msra.mxu0 %v3754_v17 }
 0x96c   :  { %2971 = vmatprep.subr.mxu0 %v3754_v17 }
 0x96d   :  { %2972 = vmatpush3.msra.mxu0 %v3754_v17 }
 0xa10   :  { %v1507_v34 = vpop.f32.mrf.mxu1 }
 0xa12   :  { %v2946_v31 = vpop.f32.mrf.mxu1 }
 0xa2a   :  { %v1580_v41 = vpop.f32.mrf.mxu0 }
 0xa2b   :  { %v1584_v32 = vadd.f32 %v3599_v63, %v1580_v41 }
 0xa2c   :  { %v2957_v42 = vpop.f32.mrf.mxu0 }
 0xa2d   :  { %v2586_v30 = vmul.f32 -1.442695, %v1584_v32 }
 0xa2f   :  { %3144 = vpow2.f32 %v2586_v30 }
 0xa3c   :  { %v3145_v33 = vpop.eup %3144 }
 0xa3d   :  { %v1588_v43 = vadd.f32 1.0, %v3145_v33 }
 0xa3f   :  { %3146 = vrcp.f32 %v1588_v43 }
 0xa4c   :  { %v3147_v49 = vpop.eup %3146 }
 0xa4d   :  { %1592 = vrot.lane.b32.xlu0 %v3147_v49, %s3236_s16 }
 0xabf   :  { %v1593_v51 = vpop.permute.xlu0 %1592 }
 0xac0   :  { %v1595_v50 = vmul.f32 %v3147_v49, %v1593_v51 }
 0xac2   :  { %v1596_v52 = vadd.f32 %v1595_v50, %v1507_v34 }
 0xac4   :  { %3148 = vtanh.f32 %v1596_v52 }
 0xad1   :  { %v3149_v35 = vpop.eup %3148 }
 0xad2   :  { %1599 = vrot.lane.b32.xlu1 %v3149_v35, %s3235_s20 }
 0xb44   :  { %v1600_v46 = vpop.permute.xlu1 %1599 }
 0xb45   :  { %v1602_v63 = vmul.f32 %v3147_v49, %v1600_v46 }
 0xb47   :  { %1604 = vrot.lane.b32.xlu0 %v1602_v63, %s3233_s17  ;;  %v1682_v62 = vsel %vm112_vm0, %v1596_v52, %v1602_v63 }
 0xb4b   :  { %1699 = vperm.xlu0 %3072, %v2589_v53  }
 0xb4f   :  { %1705 = vperm.xlu0 %3072, %v2591_v54  }
 0xb53   :  { %1711 = vperm.xlu0 %3072, %v2593_v55  }
 0xb57   :  { %1717 = vperm.xlu0 %3072, %v2595_v48   ;;  %v3957_v48 = vld [vmem:[%s4027_s5] sm:$0xff] }
 0xb5b   :  { %1982 = vrot.lane.b32.xlu0 %v3805_v39, %s3235_s20 }
 0xbb9   :  { %v1605_v37 = vpop.permute.xlu0 %1604 }
 0xbba   :  { %2967 = vmatmul.mubr.msk.f32.vlgmr.msra.gmra.mxu1 %vm112_vm0, %v1605_v37 }
 0xbbb   :  { %3005 = vmatprep.mubr.msk.f32.mxu1 %vm3234_vm9, %v3754_v17 }
 0xbc6   :  { %v1700_v28 = vpop.permute.xlu0 %1699 }
 0xbc7   :  { %vm1722_vm6 = vcmp.eq.s32.totalorder %v3315_v11, %v1700_v28 }
 0xbc8   :  { %v2597_v38 = vsel %vm1722_vm6, 1.0, %v3754_v17 }
 0xbc9   :  { %2977 = vmatprep.mubr.msk.f32.mxu0 %vm112_vm0, %v2597_v38 }
 0xbca   :  { %v1706_v58 = vpop.permute.xlu0 %1705 }
 0xbcb   :  { %vm1724_vm7 = vcmp.eq.s32.totalorder %v3315_v11, %v1706_v58 }
 0xbcc   :  { %v2599_v7 = vsel %vm1724_vm7, 1.0, %v3754_v17 }
 0xbce   :  { %v1712_v59 = vpop.permute.xlu0 %1711 }
 0xbcf   :  { %vm1726_vm12 = vcmp.eq.s32.totalorder %v3315_v11, %v1712_v59 }
 0xbd0   :  { %v2601_v9 = vsel %vm1726_vm12, 1.0, %v3754_v17 }
 0xbd2   :  { %v1718_v60 = vpop.permute.xlu0 %1717 }
 0xbd3   :  { %vm1728_vm15 = vcmp.eq.s32.totalorder %v3315_v11, %v1718_v60 }
 0xbd4   :  { %v2603_v13 = vsel %vm1728_vm15, 1.0, %v3754_v17 }
 0xbd6   :  { %v1983_v4 = vpop.permute.xlu0 %1982 }
 0xc7a   :  { %v1674_v40 = vpop.f32.mrf.mxu1 }
 0xc7b   :  { %v1675_v29 = vadd.f32 %v3606_v0, %v1674_v40  ;;  %v2596_v0 = vld [vmem:[%s4022_s0 + $0xb8] sm:$0xff] }
 0xc7c   :  { %v2968_v45 = vpop.f32.mrf.mxu1 }
 0xc7d   :  { %1679 = vrot.lane.b32.xlu1 %v1675_v29, %s3236_s16 }
 0xc81   :  { %1702 = vperm.xlu1 %3073, %v2590_v47  }
 0xc85   :  { %1708 = vperm.xlu1 %3073, %v2592_v56  }
 0xc89   :  { %1714 = vperm.xlu1 %3073, %v2594_v57  }
 0xc8d   :  { %1720 = vperm.xlu1 %3073, %v2596_v0  }
 0xcef   :  { %v1680_v61 = vpop.permute.xlu1 %1679 }
 0xcf0   :  { %v1683_v1 = vsel %vm274_vm10, %v1682_v62, %v1680_v61 }
 0xcf1   :  { %v1684_v2 = vsel %vm883_vm13, %v1683_v1, 0.0  ;;  %3205 = vmatprep.subr.msk.mxu0 %vm883_vm13, %v1683_v1 }
 0xcf2   :  { %1686 = vst [vmem:[#allocation2 + $0x8] sm:$0xff] %v1684_v2  ;;  %3206 = vmatpush3.msk.msra.mxu0 %vm883_vm13, %v1683_v1 }
 0xcf3   :  { %3207 = vmatprep.subr.msk.mxu0 %vm883_vm13, %v3624_v15 }
 0xcf4   :  { %3208 = vmatpush3.msk.msra.mxu0 %vm883_vm13, %v3624_v15 }
 0xcf5   :  { %3008 = vmatprep.subr.mxu0 %v1983_v4 }
 0xcfc   :  { %v1703_v5 = vpop.permute.xlu1 %1702 }
 0xcfd   :  { %vm1723_vm8 = vcmp.eq.s32.totalorder %v3315_v11, %v1703_v5 }
 0xcfe   :  { %v2598_v6 = vsel %vm1723_vm8, 1.0, %v3754_v17 }
 0xcff   :  { %2978 = vmatmul.mubr.msk.f32.vlgmr.msra.gmra.mxu0 %vm112_vm0, %v2598_v6 }
 0xd00   :  { %v1709_v8 = vpop.permute.xlu1 %1708  ;;  %2980 = vmatprep.mubr.msk.f32.mxu0 %vm112_vm0, %v2599_v7  ;;  %3009 = vmatpush3.msra.mxu0 %v1983_v4 }
 0xd01   :  { %vm1725_vm14 = vcmp.eq.s32.totalorder %v3315_v11, %v1709_v8  ;;  %3041 = vmatprep.subr.mxu0 %v3754_v17 }
 0xd02   :  { %v2600_v15 = vsel %vm1725_vm14, 1.0, %v3754_v17 }
 0xd03   :  { %2981 = vmatmul.mubr.msk.f32.gmra.mxu0 %vm112_vm0, %v2600_v15 }
 0xd04   :  { %v1715_v10 = vpop.permute.xlu1 %1714  ;;  %2983 = vmatprep.mubr.msk.f32.mxu0 %vm112_vm0, %v2601_v9 }
 0xd05   :  { %vm1727_vm1 = vcmp.eq.s32.totalorder %v3315_v11, %v1715_v10 }
 0xd06   :  { %v2602_v12 = vsel %vm1727_vm1, 1.0, %v3754_v17 }
 0xd07   :  { %2984 = vmatmul.mubr.msk.f32.gmra.mxu0 %vm112_vm0, %v2602_v12 }
 0xd08   :  { %v1721_v14 = vpop.permute.xlu1 %1720  ;;  %2986 = vmatprep.mubr.msk.f32.mxu0 %vm112_vm0, %v2603_v13 }
 0xd09   :  { %vm1729_vm2 = vcmp.eq.s32.totalorder %v3315_v11, %v1721_v14  ;;  %v3191_v11 = vld [vmem:[%s4028_s6 + $0x10] sm:$0xff] }
 0xd0a   :  { %v2604_v16 = vsel %vm1729_vm2, 1.0, %v3754_v17 }
 0xd0b   :  { %2987 = vmatmul.mubr.msk.f32.gmra.mxu0 %vm112_vm0, %v2604_v16 }
 0xd0c   :  { %3010 = vmatprep.mubr.msk.f32.mxu0 %vm352_vm11, %v3189_v3 }
 0xd0f   :  { %3011 = vmatmul.mubr.msk.f32.vlgmr.msra.gmra.mxu0 %vm352_vm11, %v3190_v18 }
 0xd10   :  { %3013 = vmatprep.mubr.msk.f32.mxu0 %vm352_vm11, %v3191_v11  ;;  %3042 = vmatpush3.msra.mxu0 %v3509_v24  ;;  %v3194_v24 = vld [vmem:[%s4028_s6 + $0x28] sm:$0xff] }
 0xd11   :  { %3043 = vmatprep.subr.mxu0 %v3754_v17 }
 0xd12   :  { %3044 = vmatpush3.msra.mxu0 %v3517_v25  ;;  %v3195_v25 = vld [vmem:[%s4028_s6 + $0x30] sm:$0xff] }
 0xd13   :  { %3014 = vmatmul.mubr.msk.f32.gmra.mxu0 %vm352_vm11, %v3192_v19  ;;  %3045 = vmatprep.subr.mxu0 %v3754_v17 }
 0xd14   :  { %3016 = vmatprep.mubr.msk.f32.mxu0 %vm352_vm11, %v3193_v20  ;;  %3046 = vmatpush3.msra.mxu0 %v3526_v26  ;;  %v3196_v26 = vld [vmem:[%s4028_s6 + $0x38] sm:$0xff] }
 0xd15   :  { %3047 = vmatprep.subr.mxu0 %v3754_v17 }
 0xd16   :  { %3048 = vmatpush3.msra.mxu0 %v3533_v27 }
 0xd17   :  { %3017 = vmatmul.mubr.msk.f32.gmra.mxu0 %vm352_vm11, %v3194_v24 }
 0xd18   :  { %3019 = vmatprep.mubr.msk.f32.mxu0 %vm352_vm11, %v3195_v25 }
 0xd1b   :  { %3020 = vmatmul.mubr.msk.f32.gmra.mxu0 %vm352_vm11, %v3196_v26 }
 0xd1c   :  { %3049 = vmatprep.mubr.msk.f32.mxu0 %vm3234_vm9, %v3754_v17 }
 0xdbf   :  { %v3895_v27 = vpop.f32.mrf.mxu0 }
 0xdc1   :  { %v3897_v21 = vpop.f32.mrf.mxu0 }
 0xdc3   :  { %v3899_v22 = vpop.f32.mrf.mxu0 }
 0xdc5   :  { %v3901_v23 = vpop.f32.mrf.mxu0 }
 0xdc7   :  { %v3903_v44 = vpop.f32.mrf.mxu0 }
 0xdc9   :  { %v3905_v36 = vpop.f32.mrf.mxu0 }
 0xdcb   :  { %v2988_v41 = vpop.f32.mrf.mxu0 }
 0xdcc   :  { %1901 = vrot.lane.b32.xlu1 %v2988_v41, %s3233_s17 }
 0xdcd   :  { %v3908_v32 = vpop.f32.mrf.mxu0 }
 0xdce   :  { %1899 = vrot.lane.b32.xlu0 %v3908_v32, %s3233_s17 }
 0xdcf   :  { %v3012_v42 = vpop.f32.mrf.mxu0 }
 0xdd0   :  { %1897 = vrot.lane.b32.xlu1 %v3903_v44, %s3233_s17 }
 0xdd1   :  { %v2051_v30 = vpop.f32.mrf.mxu0 }
 0xdd2   :  { %1895 = vrot.lane.b32.xlu0 %v3905_v36, %s3233_s17 }
 0xdd3   :  { %v3015_v33 = vpop.f32.mrf.mxu0 }
 0xdd4   :  { %1893 = vrot.lane.b32.xlu1 %v3899_v22, %s3233_s17 }
 0xdd5   :  { %v2061_v43 = vpop.f32.mrf.mxu0 }
 0xdd6   :  { %1891 = vrot.lane.b32.xlu0 %v3901_v23, %s3233_s17 }
 0xdd7   :  { %v3018_v34 = vpop.f32.mrf.mxu0 }
 0xdd8   :  { %1889 = vrot.lane.b32.xlu1 %v3895_v27, %s3233_s17 }
 0xdd9   :  { %v2071_v31 = vpop.f32.mrf.mxu0 }
 0xdda   :  { %1887 = vrot.lane.b32.xlu0 %v3897_v21, %s3233_s17 }
 0xddb   :  { %v3021_v49 = vpop.f32.mrf.mxu0 }
 0xddc   :  { %2112 = vrot.lane.b32.xlu1 %v3021_v49, %s3236_s16 }
 0xddd   :  { %v2081_v51 = vpop.f32.mrf.mxu0 }
 0xdde   :  { %2110 = vrot.lane.b32.xlu0 %v2081_v51, %s3236_s16 }
 0xde0   :  { %2108 = vrot.lane.b32.xlu1 %v3018_v34, %s3236_s16 }
 0xde2   :  { %2106 = vrot.lane.b32.xlu0 %v2071_v31, %s3236_s16 }
 0xde4   :  { %2104 = vrot.lane.b32.xlu1 %v3015_v33, %s3236_s16 }
 0xde6   :  { %2102 = vrot.lane.b32.xlu0 %v2061_v43, %s3236_s16 }
 0xde8   :  { %2100 = vrot.lane.b32.xlu1 %v3012_v42, %s3236_s16 }
 0xdea   :  { %2098 = vrot.lane.b32.xlu0 %v2051_v30, %s3236_s16 }
 0xdec   :  { %2192 = vrot.lane.b32.xlu1 %v2988_v41, %s3236_s16 }
 0xdee   :  { %2190 = vrot.lane.b32.xlu0 %v3908_v32, %s3236_s16 }
 0xdf0   :  { %2188 = vrot.lane.b32.xlu1 %v3903_v44, %s3236_s16 }
 0xdf2   :  { %2186 = vrot.lane.b32.xlu0 %v3905_v36, %s3236_s16 }
 0xdf4   :  { %2184 = vrot.lane.b32.xlu1 %v3899_v22, %s3236_s16 }
 0xdf6   :  { %2182 = vrot.lane.b32.xlu0 %v3901_v23, %s3236_s16 }
 0xdf8   :  { %2180 = vrot.lane.b32.xlu1 %v3895_v27, %s3236_s16 }
 0xdfa   :  { %2178 = vrot.lane.b32.xlu0 %v3897_v21, %s3236_s16 }
 0xe3e   :  { %v1902_v50 = vpop.permute.xlu1 %1901 }
 0xe3f   :  { %2990 = vmatpush3.msra.mxu1 %v1902_v50 }
 0xe40   :  { %2991 = vmatprep.subr.mxu1 %v3754_v17  ;;  %v1900_v52 = vpop.permute.xlu0 %1899 }
 0xe41   :  { %2992 = vmatpush3.msra.mxu1 %v1900_v52 }
 0xe42   :  { %v1898_v35 = vpop.permute.xlu1 %1897  ;;  %2993 = vmatprep.subr.mxu1 %v3754_v17 }
 0xe43   :  { %2994 = vmatpush3.msra.mxu1 %v1898_v35 }
 0xe44   :  { %2995 = vmatprep.subr.mxu1 %v3754_v17  ;;  %v1896_v46 = vpop.permute.xlu0 %1895 }
 0xe45   :  { %2996 = vmatpush3.msra.mxu1 %v1896_v46 }
 0xe46   :  { %v1894_v63 = vpop.permute.xlu1 %1893  ;;  %2997 = vmatprep.subr.mxu1 %v3754_v17 }
 0xe47   :  { %2998 = vmatpush3.msra.mxu1 %v1894_v63 }
 0xe48   :  { %2999 = vmatprep.subr.mxu1 %v3754_v17  ;;  %v1892_v53 = vpop.permute.xlu0 %1891 }
 0xe49   :  { %3000 = vmatpush3.msra.mxu1 %v1892_v53 }
 0xe4a   :  { %v1890_v54 = vpop.permute.xlu1 %1889  ;;  %3001 = vmatprep.subr.mxu1 %v3754_v17 }
 0xe4b   :  { %3002 = vmatpush3.msra.mxu1 %v1890_v54 }
 0xe4c   :  { %3003 = vmatprep.subr.mxu1 %v3754_v17  ;;  %v1888_v55 = vpop.permute.xlu0 %1887 }
 0xe4d   :  { %3004 = vmatpush3.msra.mxu1 %v1888_v55 }
 0xe4e   :  { %3006 = vmatmul.mubr.msk.f32.vlgmr.msra.gmra.mxu1 %vm274_vm10, %v3957_v48  ;;  %v2113_v37 = vpop.permute.xlu1 %2112  ;;  %3022 = vmatprep.subr.mxu1 %v3754_v17 }
 0xe4f   :  { %v2129_v28 = vadd.f32 %v2988_v41, %v2113_v37  ;;  %3038 = vmatprep.mubr.msk.f32.mxu1 %vm3234_vm9, %v3754_v17 }
 0xe50   :  { %v2111_v38 = vpop.permute.xlu0 %2110 }
 0xe51   :  { %v2629_v40 = vmul.f32 -1.442695, %v2129_v28  ;;  %v2128_v29 = vadd.f32 %v2111_v38, %v3908_v32 }
 0xe52   :  { %v2109_v45 = vpop.permute.xlu1 %2108 }
 0xe53   :  { %3150 = vpow2.f32 %v2629_v40  ;;  %v2628_v47 = vmul.f32 -1.442695, %v2128_v29  ;;  %v2127_v56 = vadd.f32 %v3903_v44, %v2109_v45 }
 0xe54   :  { %v2107_v57 = vpop.permute.xlu0 %2106 }
 0xe55   :  { %3152 = vpow2.f32 %v2628_v47  ;;  %v2627_v0 = vmul.f32 -1.442695, %v2127_v56  ;;  %v2126_v58 = vadd.f32 %v2107_v57, %v3905_v36 }
 0xe56   :  { %v2105_v59 = vpop.permute.xlu1 %2104 }
 0xe57   :  { %3154 = vpow2.f32 %v2627_v0  ;;  %v2626_v60 = vmul.f32 -1.442695, %v2126_v58  ;;  %v2125_v61 = vadd.f32 %v3899_v22, %v2105_v59  ;;  %v3198_v59 = vld [vmem:[%s4025_s3 + $0x18] sm:$0xff] }
 0xe58   :  { %v2103_v62 = vpop.permute.xlu0 %2102 }
 0xe59   :  { %3156 = vpow2.f32 %v2626_v60  ;;  %v2625_v1 = vmul.f32 -1.442695, %v2125_v61  ;;  %v2124_v2 = vadd.f32 %v2103_v62, %v3901_v23  ;;  %v3199_v60 = vld [vmem:[%s4025_s3 + $0x10] sm:$0xff]  ;;  %v3201_v61 = vld [vmem:[%s4025_s3] sm:$0xff] }
 0xe5a   :  { %v2101_v4 = vpop.permute.xlu1 %2100 }
 0xe5b   :  { %3158 = vpow2.f32 %v2625_v1  ;;  %v2624_v5 = vmul.f32 -1.442695, %v2124_v2  ;;  %v2123_v6 = vadd.f32 %v3895_v27, %v2101_v4 }
 0xe5c   :  { %v2099_v7 = vpop.permute.xlu0 %2098 }
 0xe5d   :  { %3160 = vpow2.f32 %v2624_v5  ;;  %v2623_v8 = vmul.f32 -1.442695, %v2123_v6  ;;  %v2122_v15 = vadd.f32 %v2099_v7, %v3897_v21 }
 0xe5e   :  { %v2193_v25 = vpop.permute.xlu1 %2192 }
 0xe5f   :  { %3162 = vpow2.f32 %v2623_v8  ;;  %v2622_v9 = vmul.f32 -1.442695, %v2122_v15 }
 0xe60   :  { %v3151_v10 = vpop.eup %3150  ;;  %v2191_v21 = vpop.permute.xlu0 %2190 }
 0xe61   :  { %v2161_v12 = vadd.f32 1.0, %v3151_v10  ;;  %3164 = vpow2.f32 %v2622_v9 }
 0xe62   :  { %v3153_v13 = vpop.eup %3152  ;;  %v2189_v41 = vpop.permute.xlu1 %2188 }
 0xe63   :  { %3166 = vrcp.f32 %v2161_v12  ;;  %v2160_v14 = vadd.f32 1.0, %v3153_v13 }
 0xe64   :  { %v3155_v16 = vpop.eup %3154  ;;  %v2187_v30 = vpop.permute.xlu0 %2186 }
 0xe65   :  { %3168 = vrcp.f32 %v2160_v14  ;;  %v2159_v3 = vadd.f32 1.0, %v3155_v16 }
 0xe66   :  { %v3157_v18 = vpop.eup %3156  ;;  %v2185_v49 = vpop.permute.xlu1 %2184 }
 0xe67   :  { %3170 = vrcp.f32 %v2159_v3  ;;  %v2158_v11 = vadd.f32 1.0, %v3157_v18 }
 0xe68   :  { %v3159_v19 = vpop.eup %3158  ;;  %v2183_v52 = vpop.permute.xlu0 %2182 }
 0xe69   :  { %3172 = vrcp.f32 %v2158_v11  ;;  %v2157_v20 = vadd.f32 1.0, %v3159_v19  ;;  %v3202_v11 = vld [vmem:[%s4026_s4] ss:$0 sm:$0xff] }
 0xe6a   :  { %v3161_v24 = vpop.eup %3160  ;;  %v2181_v54 = vpop.permute.xlu1 %2180 }
 0xe6b   :  { %3174 = vrcp.f32 %v2157_v20  ;;  %v2156_v26 = vadd.f32 1.0, %v3161_v24 }
 0xe6c   :  { %v3163_v27 = vpop.eup %3162  ;;  %v2179_v28 = vpop.permute.xlu0 %2178 }
 0xe6d   :  { %3176 = vrcp.f32 %v2156_v26  ;;  %v2155_v22 = vadd.f32 1.0, %v3163_v27 }
 0xe6e   :  { %v3165_v23 = vpop.eup %3164 }
 0xe6f   :  { %3178 = vrcp.f32 %v2155_v22  ;;  %v2154_v44 = vadd.f32 1.0, %v3165_v23 }
 0xe70   :  { %v3167_v36 = vpop.eup %3166 }
 0xe71   :  { %3180 = vrcp.f32 %v2154_v44  ;;  %v2209_v32 = vmul.f32 %v3167_v36, %v2193_v25 }
 0xe72   :  { %v3169_v42 = vpop.eup %3168 }
 0xe73   :  { %v2208_v33 = vmul.f32 %v3169_v42, %v2191_v21  ;;  %2232 = vrot.lane.b32.xlu1 %v2209_v32, %s3236_s16 }
 0xe74   :  { %v3171_v43 = vpop.eup %3170 }
 0xe75   :  { %v2207_v34 = vmul.f32 %v3171_v43, %v2189_v41  ;;  %2230 = vrot.lane.b32.xlu0 %v2208_v33, %s3236_s16 }
 0xe76   :  { %v3173_v31 = vpop.eup %3172 }
 0xe77   :  { %v2206_v51 = vmul.f32 %v3173_v31, %v2187_v30  ;;  %2228 = vrot.lane.b32.xlu1 %v2207_v34, %s3236_s16 }
 0xe78   :  { %v3175_v50 = vpop.eup %3174 }
 0xe79   :  { %v2205_v35 = vmul.f32 %v3175_v50, %v2185_v49  ;;  %2226 = vrot.lane.b32.xlu0 %v2206_v51, %s3236_s16 }
 0xe7a   :  { %v3177_v46 = vpop.eup %3176 }
 0xe7b   :  { %v2204_v63 = vmul.f32 %v3177_v46, %v2183_v52  ;;  %2224 = vrot.lane.b32.xlu1 %v2205_v35, %s3236_s16 }
 0xe7c   :  { %v3179_v53 = vpop.eup %3178 }
 0xe7d   :  { %v2203_v55 = vmul.f32 %v3179_v53, %v2181_v54  ;;  %2222 = vrot.lane.b32.xlu0 %v2204_v63, %s3236_s16 }
 0xe7e   :  { %v3181_v37 = vpop.eup %3180 }
 0xe7f   :  { %v2202_v38 = vmul.f32 %v3181_v37, %v2179_v28  ;;  %2220 = vrot.lane.b32.xlu1 %v2203_v55, %s3236_s16 }
 0xe81   :  { %2218 = vrot.lane.b32.xlu0 %v2202_v38, %s3236_s16 }
 0xee5   :  { %v2233_v40 = vpop.permute.xlu1 %2232 }
 0xee6   :  { %3023 = vmatpush3.msra.mxu1 %v2233_v40 }
 0xee7   :  { %3024 = vmatprep.subr.mxu1 %v3754_v17  ;;  %v2231_v29 = vpop.permute.xlu0 %2230 }
 0xee8   :  { %3025 = vmatpush3.msra.mxu1 %v2231_v29 }
 0xee9   :  { %v2229_v45 = vpop.permute.xlu1 %2228  ;;  %3026 = vmatprep.subr.mxu1 %v3754_v17 }
 0xeea   :  { %3027 = vmatpush3.msra.mxu1 %v2229_v45 }
 0xeeb   :  { %3028 = vmatprep.subr.mxu1 %v3754_v17  ;;  %v2227_v47 = vpop.permute.xlu0 %2226 }
 0xeec   :  { %3029 = vmatpush3.msra.mxu1 %v2227_v47 }
 0xeed   :  { %v2225_v56 = vpop.permute.xlu1 %2224  ;;  %3030 = vmatprep.subr.mxu1 %v3754_v17 }
 0xeee   :  { %3031 = vmatpush3.msra.mxu1 %v2225_v56 }
 0xeef   :  { %3032 = vmatprep.subr.mxu1 %v3754_v17  ;;  %v2223_v57 = vpop.permute.xlu0 %2222 }
 0xef0   :  { %3033 = vmatpush3.msra.mxu1 %v2223_v57 }
 0xef1   :  { %v2221_v0 = vpop.permute.xlu1 %2220  ;;  %3034 = vmatprep.subr.mxu1 %v3754_v17 }
 0xef2   :  { %3035 = vmatpush3.msra.mxu1 %v2221_v0 }
 0xef3   :  { %3036 = vmatprep.subr.mxu1 %v3754_v17  ;;  %v2219_v58 = vpop.permute.xlu0 %2218 }
 0xef4   :  { %3037 = vmatpush3.msra.mxu1 %v2219_v58 }
 0xef5   :  { %3039 = vmatmul.mubr.msk.f32.vlgmr.msra.gmra.mxu1 %vm274_vm10, %v3957_v48  ;;  %3052 = vmatprep.subr.mxu1 %v3754_v17  ;;  %v3200_v48 = vld [vmem:[%s4025_s3 + $0x8] sm:$0xff] }
 0xef6   :  { %3053 = vmatpush3.msra.mxu1 %v3198_v59  ;;  %3060 = vmatprep.mubr.msk.f32.mxu1 %vm3234_vm9, %v3754_v17 }
 0xef7   :  { %3054 = vmatprep.subr.mxu1 %v3754_v17 }
 0xef8   :  { %3055 = vmatpush3.msra.mxu1 %v3199_v60 }
 0xef9   :  { %3056 = vmatprep.subr.mxu1 %v3754_v17 }
 0xefa   :  { %3057 = vmatpush3.msra.mxu1 %v3200_v48 }
 0xefb   :  { %3058 = vmatprep.subr.mxu1 %v3754_v17 }
 0xefc   :  { %3059 = vmatpush3.msra.mxu1 %v3201_v61 }
 0xf0e   :  { %v1977_v62 = vpop.f32.mrf.mxu1 }
 0xf0f   :  { %3050 = vmatmul.mubr.msk.f32.vlgmr.msra.gmra.mxu0 %vm112_vm0, %v1977_v62 }
 0xf10   :  { %v3007_v1 = vpop.f32.mrf.mxu1 }
 0xfb5   :  { %v2308_v15 = vpop.f32.mrf.mxu1 }
 0xfb7   :  { %v3040_v17 = vpop.f32.mrf.mxu1 }
 0xfcf   :  { %v2381_v2 = vpop.f32.mrf.mxu0 }
 0xfd0   :  { %v2385_v4 = vadd.f32 %v3805_v39, %v2381_v2 }
 0xfd1   :  { %v3051_v5 = vpop.f32.mrf.mxu0 }
 0xfd2   :  { %v2632_v6 = vmul.f32 -1.442695, %v2385_v4 }
 0xfd4   :  { %3182 = vpow2.f32 %v2632_v6 }
 0xfe1   :  { %v3183_v7 = vpop.eup %3182 }
 0xfe2   :  { %v2389_v8 = vadd.f32 1.0, %v3183_v7 }
 0xfe4   :  { %3184 = vrcp.f32 %v2389_v8 }
 0xff1   :  { %v3185_v9 = vpop.eup %3184 }
 0xff2   :  { %2393 = vrot.lane.b32.xlu1 %v3185_v9, %s3236_s16 }
0x1064   :  { %v2394_v10 = vpop.permute.xlu1 %2393 }
0x1065   :  { %v2396_v12 = vmul.f32 %v3185_v9, %v2394_v10 }
0x1067   :  { %v2397_v13 = vadd.f32 %v2396_v12, %v2308_v15 }
0x1069   :  { %3186 = vtanh.f32 %v2397_v13 }
0x1076   :  { %v3187_v14 = vpop.eup %3186 }
0x1077   :  { %2400 = vrot.lane.b32.xlu0 %v3187_v14, %s3235_s20 }
0x10e9   :  { %v2401_v16 = vpop.permute.xlu0 %2400 }
0x10ea   :  { %v2403_v39 = vmul.f32 %v3185_v9, %v2401_v16 }
0x10ec   :  { %2405 = vrot.lane.b32.xlu1 %v2403_v39, %s3233_s17  ;;  %v2483_v25 = vsel %vm112_vm0, %v2397_v13, %v2403_v39  ;;  %s3209_s17 = scalar_lea.vmem %s2494_s8, 512 }
0x10ed   :  { %p3210_p0 = scmp.ne.s32.totalorder %s2494_s8, %s3209_s17  ;;  %p3215_p2 = scmp.lt.s32.totalorder %s3209_s17, %s3209_s17 }
0x10ef   :  { %p3216_p3 = por %p3215_p2, %p3214_p1 }
0x10f1   :  { %p3217_p4 = pnand %p3216_p3, %p3210_p0 }
0x115e   :  { %v2406_v3 = vpop.permute.xlu1 %2405 }
0x115f   :  { %3061 = vmatmul.mubr.msk.f32.vlgmr.msra.gmra.mxu1 %vm112_vm0, %v2406_v3 }
0x121f   :  { %v2475_v18 = vpop.f32.mrf.mxu1 }
0x1220   :  { %v2476_v19 = vadd.f32 %v3202_v11, %v2475_v18 }
0x1221   :  { %v3062_v20 = vpop.f32.mrf.mxu1 }
0x1222   :  { %2480 = vrot.lane.b32.xlu0 %v2476_v19, %s3236_s16 }
0x1294   :  { %v2481_v24 = vpop.permute.xlu0 %2480 }
0x1295   :  { %v2484_v26 = vsel %vm274_vm10, %v2483_v25, %v2481_v24 }
0x1296   :  { %v2485_v27 = vsel %vm883_vm13, %v2484_v26, 0.0 }
0x1297   :  { %2487 = vst [vmem:[#allocation2 + $0x10] sm:$0xff] %v2485_v27 }
0x1298   :  { %3220 = shalt.err (!%p3217_p4)
}
0x1299   :  { %s3238_s4 = smov 128   ;;  %s3239_s20 = smov 8  }
0x129a   :  { %2499 = dma.vmem_to_hbm [thread:$0]  %s2494_s8, 512, %s4029_s7, [#allocation3], %s3238_s4, %s3238_s4, %s3239_s20  }
0x129b   :  { %3229 = dma.done.wait [#allocation3], 512  }
0x129c   :  { %3230 = vsyncadd [#allocation3], 4294966784 }
0x129d   :  { %2503 = vsyncpa [#allocation3], 1 }

</bundles_post_ra>
